<compile_context>
chip_gen: v7x
topology: tpu7x:2x2x1
jax: 0.10.0
libtpu: 0.0.40
codegen_flags: <defaults>
</compile_context>

<pallas_src>
import jax
import jax.numpy as jnp
from jax.experimental import pallas as pl
from jax.experimental.pallas import tpu as pltpu

# ---- model hyperparameters (from the PyTorch module) ----------------------
CHAR_EMBEDDING_DIM = 10
LSTM_HIDDEN = 50
MLP_HIDDEN = 50
VOCAB_SIZE = 14
PAD_IDX = 0

HP = 128  # padded per-gate / hidden lane width (one full vreg lane tile)


def _rnn_kernel(xp_ref, m_ref, whh_ref, wf_ref, bf_ref, out_ref):
    """xp_ref:  (S, BP, 4*HP) f32   precomputed x_t@W_ih^T + b_ih + b_hh, gate-padded
       m_ref:   (S, BP, 1)    f32   1.0 where token != PAD
       whh_ref: (HP, 4*HP)    bf16  gate-padded W_hh^T
       wf_ref:  (HP, HP)      f32   fused (w1^T @ w2^T), only [:50, :1] nonzero
       bf_ref:  (1, HP)       f32   fused bias
       out_ref: (BP, HP)      f32   sigmoid(logit) in column 0
    """
    S = xp_ref.shape[0]
    BP = xp_ref.shape[1]

    def _sig(x):  # sigmoid via tanh: one EUP op, no VALU divide
        return 0.5 * jnp.tanh(0.5 * x) + 0.5

    # Mask compare hoisted out of the loop; only ~1 vreg stays live.
    keep_all = m_ref[...] > 0.0                              # (S, BP, 1) bool

    h = jnp.zeros((BP, HP), jnp.float32)
    c = jnp.zeros((BP, HP), jnp.float32)

    # Fully unrolled recurrence (S is small); all slices are static & aligned.
    # W_hh and xp are sliced / streamed from VMEM refs each step -> no spills.
    for t in range(S):
        rec = jnp.dot(h.astype(jnp.bfloat16), whh_ref[...],
                      preferred_element_type=jnp.float32)     # (BP, 4*HP)
        gates = xp_ref[t] + rec

        # PyTorch LSTMCell gate order: i, f, g, o -- one 128-lane slot each.
        i_g = _sig(gates[:, 0 * HP:1 * HP])
        f_g = _sig(gates[:, 1 * HP:2 * HP])
        g_g = jnp.tanh(gates[:, 2 * HP:3 * HP])
        o_g = _sig(gates[:, 3 * HP:4 * HP])

        c_new = f_g * c + i_g * g_g
        h_new = o_g * jnp.tanh(c_new)

        keep = keep_all[t]                                    # (BP, 1)
        h = jnp.where(keep, h_new, h)
        c = jnp.where(keep, c_new, c)

    # Fused output MLP: Linear(50,50) -> Linear(50,1) collapsed into one matmul.
    logit = jnp.dot(h, wf_ref[...], preferred_element_type=jnp.float32) + bf_ref[...]
    out_ref[...] = _sig(logit)


def _pad_gate_cols(w):
    """(K, 4*H) -> (K, 4*HP): each gate gets its own 128-lane slot, rest zero."""
    H = LSTM_HIDDEN
    out = jnp.zeros((w.shape[0], 4 * HP), jnp.float32)
    for g in range(4):
        out = out.at[:, g * HP:g * HP + H].set(w[:, g * H:(g + 1) * H])
    return out


@jax.jit
def rnn_forward(tokens, params):
    """tokens: int32 (B, S). Returns float32 (B, 1)."""
    B, S = tokens.shape
    H, M = LSTM_HIDDEN, MLP_HIDDEN
    BP = max(8, pl.cdiv(B, 8) * 8)              # pad batch to a full sublane tile

    # --- glue: batch pad, time-major tokens, mask --------------------------
    tokens_p = jnp.full((BP, S), PAD_IDX, dtype=jnp.int32).at[:B].set(tokens)
    tok_tm = jnp.transpose(tokens_p)                                   # (S, BP)
    mask = (tok_tm != PAD_IDX).astype(jnp.float32)[:, :, None]         # (S, BP, 1)

    # --- embedding folded into the input projection: tiny per-token table --
    # table[tok] = emb[tok] @ W_ih^T + b_ih + b_hh, gate-padded to 4*128 lanes.
    table = (params["emb"] @ params["w_ih"].T
             + (params["b_ih"] + params["b_hh"])[None, :])             # (V, 4H)
    table_pad = _pad_gate_cols(table)                                  # (V, 4*HP)
    xp = jnp.take(table_pad, tok_tm, axis=0)                           # (S, BP, 4*HP)

    # --- recurrent weight: gate-padded, bf16 (f32 accumulation in-kernel) ---
    whh_pad = jnp.zeros((HP, 4 * HP), jnp.float32).at[:H, :].set(
        _pad_gate_cols(params["w_hh"].T)).astype(jnp.bfloat16)         # (HP, 4*HP)

    # --- fused output MLP (no nonlinearity between the two Linears) ---------
    w_fused = params["w1"].T @ params["w2"].T                          # (H, 1)
    b_fused = params["b1"] @ params["w2"].T + params["b2"]             # (1,)
    wf_pad = jnp.zeros((HP, HP), jnp.float32).at[:H, :1].set(w_fused)
    bf_pad = jnp.zeros((1, HP), jnp.float32).at[:, :1].set(b_fused[None, :])

    # --- cost hint so XLA schedules the microsecond-scale call tightly ------
    flops = S * 2 * BP * HP * (4 * HP) + 2 * BP * HP * HP
    transcendentals = S * 5 * BP * HP + BP * HP
    bytes_accessed = (4 * (S * BP * 4 * HP + S * BP + HP * HP + HP + BP * HP)
                      + 2 * HP * 4 * HP)

    vmem = pl.BlockSpec(memory_space=pltpu.MemorySpace.VMEM)
    out_pad = pl.pallas_call(
        _rnn_kernel,
        out_shape=jax.ShapeDtypeStruct((BP, HP), jnp.float32),
        in_specs=[vmem] * 5,
        out_specs=vmem,
        cost_estimate=pl.CostEstimate(flops=flops,
                                      transcendentals=transcendentals,
                                      bytes_accessed=bytes_accessed),
    )(xp, mask, whh_pad, wf_pad, bf_pad)

    return out_pad[:B, :1]


def init_params(key):
    ks = jax.random.split(key, 8)
    E, H, M, V = CHAR_EMBEDDING_DIM, LSTM_HIDDEN, MLP_HIDDEN, VOCAB_SIZE
    emb = 0.1 * jax.random.normal(ks[0], (V, E), jnp.float32)
    emb = emb.at[PAD_IDX].set(0.0)                 # padding_idx row is zero
    return {
        "emb": emb,
        "w_ih": 0.1 * jax.random.normal(ks[1], (4 * H, E), jnp.float32),
        "w_hh": 0.1 * jax.random.normal(ks[2], (4 * H, H), jnp.float32),
        "b_ih": 0.1 * jax.random.normal(ks[3], (4 * H,), jnp.float32),
        "b_hh": 0.1 * jax.random.normal(ks[4], (4 * H,), jnp.float32),
        "w1": 0.1 * jax.random.normal(ks[5], (M, H), jnp.float32),
        "b1": jnp.zeros((M,), jnp.float32),
        "w2": 0.1 * jax.random.normal(ks[6], (1, M), jnp.float32),
        "b2": jnp.zeros((1,), jnp.float32),
    }


def rnn_reference(tokens, params):
    """Pure-JAX f32 reference reproducing the PyTorch forward exactly."""
    emb = jnp.take(params["emb"], tokens, axis=0)             # (B, S, E)
    mask = (tokens != PAD_IDX).astype(jnp.float32)            # (B, S)
    B, S, _ = emb.shape
    H = LSTM_HIDDEN
    h = jnp.zeros((B, H), jnp.float32)
    c = jnp.zeros((B, H), jnp.float32)
    for t in range(S):
        x = emb[:, t, :]
        m = mask[:, t][:, None]
        gates = (x @ params["w_ih"].T + params["b_ih"]
                 + h @ params["w_hh"].T + params["b_hh"])
        i_g = jax.nn.sigmoid(gates[:, 0 * H:1 * H])
        f_g = jax.nn.sigmoid(gates[:, 1 * H:2 * H])
        g_g = jnp.tanh(gates[:, 2 * H:3 * H])
        o_g = jax.nn.sigmoid(gates[:, 3 * H:4 * H])
        c_new = f_g * c + i_g * g_g
        h_new = o_g * jnp.tanh(c_new)
        h = h_new * m + h * (1.0 - m)
        c = c_new * m + c * (1.0 - m)
    hid = h @ params["w1"].T + params["b1"]
    return jax.nn.sigmoid(hid @ params["w2"].T + params["b2"])


if __name__ == "__main__":
    key = jax.random.PRNGKey(0)
    pkey, tkey = jax.random.split(key)
    params = init_params(pkey)

    B, S = 4, 8
    tokens = jax.random.randint(tkey, (B, S), 0, VOCAB_SIZE, dtype=jnp.int32)
    # force some padding positions (like '<SHORT>'-padded sequences)
    tokens = tokens.at[:, -2:].set(PAD_IDX)

    out = jax.block_until_ready(rnn_forward(tokens, params))
    ref = rnn_reference(tokens, params)

    assert out.shape == (B, 1)
    # Tolerance relaxed vs pure-f32 because the recurrent matmul uses bf16
    # operands (f32 accumulation); error is ~1e-4 at these weight scales.
    assert jnp.allclose(out, ref, atol=2e-3, rtol=1e-2), (out, ref)
    print("KERNEL_OK")
</pallas_src>

<mosaic_0001>
module attributes {stable_mosaic.version = 11 : i64} {
  func.func @_rnn_kernel(%arg0: memref<8x8x512xf32, #tpu.memory_space<vmem>>, %arg1: memref<8x8x1xf32, #tpu.memory_space<vmem>>, %arg2: memref<128x512xbf16, #tpu.memory_space<vmem>>, %arg3: memref<128x128xf32, #tpu.memory_space<vmem>>, %arg4: memref<1x128xf32, #tpu.memory_space<vmem>>, %arg5: memref<8x128xf32, #tpu.memory_space<vmem>>) attributes {dimension_semantics = [], scalar_prefetch = 0 : i64, scratch_operands = 0 : i64, tpu.core_type = #tpu.core_type<tc>} {
    %c0 = arith.constant 0 : index
    %c0_0 = arith.constant 0 : index
    %c0_1 = arith.constant 0 : index
    %0 = vector.load %arg1[%c0, %c0_0, %c0_1] : memref<8x8x1xf32, #tpu.memory_space<vmem>>, vector<8x8x1xf32>
    %cst = arith.constant 0.000000e+00 : f32
    %1 = vector.broadcast %cst : f32 to vector<8x8x1xf32>
    %2 = arith.cmpf ogt, %0, %1 : vector<8x8x1xf32>
    %cst_2 = arith.constant 0.000000e+00 : f32
    %3 = vector.broadcast %cst_2 : f32 to vector<8x128xf32>
    %cst_3 = arith.constant 0.000000e+00 : f32
    %4 = vector.broadcast %cst_3 : f32 to vector<8x128xf32>
    %5 = arith.truncf %3 : vector<8x128xf32> to vector<8x128xbf16>
    %c0_4 = arith.constant 0 : index
    %c0_5 = arith.constant 0 : index
    %6 = vector.load %arg2[%c0_4, %c0_5] : memref<128x512xbf16, #tpu.memory_space<vmem>>, vector<128x512xbf16>
    %cst_6 = arith.constant dense<0.000000e+00> : vector<8x512xf32>
    %7 = tpu.matmul %5, %6, %cst_6 {dimension_numbers = #tpu.dot_dimension_numbers<[1], [0], [0], [1], [0, 0, 1, 1], [], []>} : vector<8x128xbf16>, vector<128x512xbf16>, vector<8x512xf32> -> vector<8x512xf32>
    %c0_7 = arith.constant 0 : index
    %c0_8 = arith.constant 0 : index
    %c0_9 = arith.constant 0 : index
    %8 = vector.load %arg0[%c0_7, %c0_8, %c0_9] : memref<8x8x512xf32, #tpu.memory_space<vmem>>, vector<1x8x512xf32>
    %9 = vector.shape_cast %8 : vector<1x8x512xf32> to vector<8x512xf32>
    %10 = arith.addf %9, %7 : vector<8x512xf32>
    %11 = vector.extract_strided_slice %10 {offsets = [0, 0], sizes = [8, 128], strides = [1, 1]} : vector<8x512xf32> to vector<8x128xf32>
    %cst_10 = arith.constant 5.000000e-01 : f32
    %12 = vector.broadcast %cst_10 : f32 to vector<8x128xf32>
    %13 = arith.mulf %12, %11 : vector<8x128xf32>
    %14 = math.tanh %13 : vector<8x128xf32>
    %cst_11 = arith.constant 5.000000e-01 : f32
    %15 = vector.broadcast %cst_11 : f32 to vector<8x128xf32>
    %16 = arith.mulf %15, %14 : vector<8x128xf32>
    %cst_12 = arith.constant 5.000000e-01 : f32
    %17 = vector.broadcast %cst_12 : f32 to vector<8x128xf32>
    %18 = arith.addf %16, %17 : vector<8x128xf32>
    %19 = vector.extract_strided_slice %10 {offsets = [0, 128], sizes = [8, 128], strides = [1, 1]} : vector<8x512xf32> to vector<8x128xf32>
    %cst_13 = arith.constant 5.000000e-01 : f32
    %20 = vector.broadcast %cst_13 : f32 to vector<8x128xf32>
    %21 = arith.mulf %20, %19 : vector<8x128xf32>
    %22 = math.tanh %21 : vector<8x128xf32>
    %cst_14 = arith.constant 5.000000e-01 : f32
    %23 = vector.broadcast %cst_14 : f32 to vector<8x128xf32>
    %24 = arith.mulf %23, %22 : vector<8x128xf32>
    %cst_15 = arith.constant 5.000000e-01 : f32
    %25 = vector.broadcast %cst_15 : f32 to vector<8x128xf32>
    %26 = arith.addf %24, %25 : vector<8x128xf32>
    %27 = vector.extract_strided_slice %10 {offsets = [0, 256], sizes = [8, 128], strides = [1, 1]} : vector<8x512xf32> to vector<8x128xf32>
    %28 = math.tanh %27 : vector<8x128xf32>
    %29 = vector.extract_strided_slice %10 {offsets = [0, 384], sizes = [8, 128], strides = [1, 1]} : vector<8x512xf32> to vector<8x128xf32>
    %cst_16 = arith.constant 5.000000e-01 : f32
    %30 = vector.broadcast %cst_16 : f32 to vector<8x128xf32>
    %31 = arith.mulf %30, %29 : vector<8x128xf32>
    %32 = math.tanh %31 : vector<8x128xf32>
    %cst_17 = arith.constant 5.000000e-01 : f32
    %33 = vector.broadcast %cst_17 : f32 to vector<8x128xf32>
    %34 = arith.mulf %33, %32 : vector<8x128xf32>
    %cst_18 = arith.constant 5.000000e-01 : f32
    %35 = vector.broadcast %cst_18 : f32 to vector<8x128xf32>
    %36 = arith.addf %34, %35 : vector<8x128xf32>
    %37 = arith.mulf %26, %4 : vector<8x128xf32>
    %38 = arith.mulf %18, %28 : vector<8x128xf32>
    %39 = arith.addf %37, %38 : vector<8x128xf32>
    %40 = math.tanh %39 : vector<8x128xf32>
    %41 = arith.mulf %36, %40 : vector<8x128xf32>
    %42 = vector.extract_strided_slice %2 {offsets = [0, 0, 0], sizes = [1, 8, 1], strides = [1, 1, 1]} : vector<8x8x1xi1> to vector<1x8x1xi1>
    %43 = vector.shape_cast %42 : vector<1x8x1xi1> to vector<8x1xi1>
    %44 = vector.shape_cast %43 : vector<8x1xi1> to vector<8x1xi1>
    %45 = vector.broadcast %44 : vector<8x1xi1> to vector<8x128xi1>
    %46 = arith.select %45, %41, %3 : vector<8x128xi1>, vector<8x128xf32>
    %47 = vector.shape_cast %43 : vector<8x1xi1> to vector<8x1xi1>
    %48 = vector.broadcast %47 : vector<8x1xi1> to vector<8x128xi1>
    %49 = arith.select %48, %39, %4 : vector<8x128xi1>, vector<8x128xf32>
    %50 = arith.truncf %46 : vector<8x128xf32> to vector<8x128xbf16>
    %c0_19 = arith.constant 0 : index
    %c0_20 = arith.constant 0 : index
    %51 = vector.load %arg2[%c0_19, %c0_20] : memref<128x512xbf16, #tpu.memory_space<vmem>>, vector<128x512xbf16>
    %cst_21 = arith.constant dense<0.000000e+00> : vector<8x512xf32>
    %52 = tpu.matmul %50, %51, %cst_21 {dimension_numbers = #tpu.dot_dimension_numbers<[1], [0], [0], [1], [0, 0, 1, 1], [], []>} : vector<8x128xbf16>, vector<128x512xbf16>, vector<8x512xf32> -> vector<8x512xf32>
    %c1 = arith.constant 1 : index
    %c0_22 = arith.constant 0 : index
    %c0_23 = arith.constant 0 : index
    %53 = vector.load %arg0[%c1, %c0_22, %c0_23] : memref<8x8x512xf32, #tpu.memory_space<vmem>>, vector<1x8x512xf32>
    %54 = vector.shape_cast %53 : vector<1x8x512xf32> to vector<8x512xf32>
    %55 = arith.addf %54, %52 : vector<8x512xf32>
    %56 = vector.extract_strided_slice %55 {offsets = [0, 0], sizes = [8, 128], strides = [1, 1]} : vector<8x512xf32> to vector<8x128xf32>
    %cst_24 = arith.constant 5.000000e-01 : f32
    %57 = vector.broadcast %cst_24 : f32 to vector<8x128xf32>
    %58 = arith.mulf %57, %56 : vector<8x128xf32>
    %59 = math.tanh %58 : vector<8x128xf32>
    %cst_25 = arith.constant 5.000000e-01 : f32
    %60 = vector.broadcast %cst_25 : f32 to vector<8x128xf32>
    %61 = arith.mulf %60, %59 : vector<8x128xf32>
    %cst_26 = arith.constant 5.000000e-01 : f32
    %62 = vector.broadcast %cst_26 : f32 to vector<8x128xf32>
    %63 = arith.addf %61, %62 : vector<8x128xf32>
    %64 = vector.extract_strided_slice %55 {offsets = [0, 128], sizes = [8, 128], strides = [1, 1]} : vector<8x512xf32> to vector<8x128xf32>
    %cst_27 = arith.constant 5.000000e-01 : f32
    %65 = vector.broadcast %cst_27 : f32 to vector<8x128xf32>
    %66 = arith.mulf %65, %64 : vector<8x128xf32>
    %67 = math.tanh %66 : vector<8x128xf32>
    %cst_28 = arith.constant 5.000000e-01 : f32
    %68 = vector.broadcast %cst_28 : f32 to vector<8x128xf32>
    %69 = arith.mulf %68, %67 : vector<8x128xf32>
    %cst_29 = arith.constant 5.000000e-01 : f32
    %70 = vector.broadcast %cst_29 : f32 to vector<8x128xf32>
    %71 = arith.addf %69, %70 : vector<8x128xf32>
    %72 = vector.extract_strided_slice %55 {offsets = [0, 256], sizes = [8, 128], strides = [1, 1]} : vector<8x512xf32> to vector<8x128xf32>
    %73 = math.tanh %72 : vector<8x128xf32>
    %74 = vector.extract_strided_slice %55 {offsets = [0, 384], sizes = [8, 128], strides = [1, 1]} : vector<8x512xf32> to vector<8x128xf32>
    %cst_30 = arith.constant 5.000000e-01 : f32
    %75 = vector.broadcast %cst_30 : f32 to vector<8x128xf32>
    %76 = arith.mulf %75, %74 : vector<8x128xf32>
    %77 = math.tanh %76 : vector<8x128xf32>
    %cst_31 = arith.constant 5.000000e-01 : f32
    %78 = vector.broadcast %cst_31 : f32 to vector<8x128xf32>
    %79 = arith.mulf %78, %77 : vector<8x128xf32>
    %cst_32 = arith.constant 5.000000e-01 : f32
    %80 = vector.broadcast %cst_32 : f32 to vector<8x128xf32>
    %81 = arith.addf %79, %80 : vector<8x128xf32>
    %82 = arith.mulf %71, %49 : vector<8x128xf32>
    %83 = arith.mulf %63, %73 : vector<8x128xf32>
    %84 = arith.addf %82, %83 : vector<8x128xf32>
    %85 = math.tanh %84 : vector<8x128xf32>
    %86 = arith.mulf %81, %85 : vector<8x128xf32>
    %87 = vector.extract_strided_slice %2 {offsets = [1, 0, 0], sizes = [1, 8, 1], strides = [1, 1, 1]} : vector<8x8x1xi1> to vector<1x8x1xi1>
    %88 = vector.shape_cast %87 : vector<1x8x1xi1> to vector<8x1xi1>
    %89 = vector.shape_cast %88 : vector<8x1xi1> to vector<8x1xi1>
    %90 = vector.broadcast %89 : vector<8x1xi1> to vector<8x128xi1>
    %91 = arith.select %90, %86, %46 : vector<8x128xi1>, vector<8x128xf32>
    %92 = vector.shape_cast %88 : vector<8x1xi1> to vector<8x1xi1>
    %93 = vector.broadcast %92 : vector<8x1xi1> to vector<8x128xi1>
    %94 = arith.select %93, %84, %49 : vector<8x128xi1>, vector<8x128xf32>
    %95 = arith.truncf %91 : vector<8x128xf32> to vector<8x128xbf16>
    %c0_33 = arith.constant 0 : index
    %c0_34 = arith.constant 0 : index
    %96 = vector.load %arg2[%c0_33, %c0_34] : memref<128x512xbf16, #tpu.memory_space<vmem>>, vector<128x512xbf16>
    %cst_35 = arith.constant dense<0.000000e+00> : vector<8x512xf32>
    %97 = tpu.matmul %95, %96, %cst_35 {dimension_numbers = #tpu.dot_dimension_numbers<[1], [0], [0], [1], [0, 0, 1, 1], [], []>} : vector<8x128xbf16>, vector<128x512xbf16>, vector<8x512xf32> -> vector<8x512xf32>
    %c2 = arith.constant 2 : index
    %c0_36 = arith.constant 0 : index
    %c0_37 = arith.constant 0 : index
    %98 = vector.load %arg0[%c2, %c0_36, %c0_37] : memref<8x8x512xf32, #tpu.memory_space<vmem>>, vector<1x8x512xf32>
    %99 = vector.shape_cast %98 : vector<1x8x512xf32> to vector<8x512xf32>
    %100 = arith.addf %99, %97 : vector<8x512xf32>
    %101 = vector.extract_strided_slice %100 {offsets = [0, 0], sizes = [8, 128], strides = [1, 1]} : vector<8x512xf32> to vector<8x128xf32>
    %cst_38 = arith.constant 5.000000e-01 : f32
    %102 = vector.broadcast %cst_38 : f32 to vector<8x128xf32>
    %103 = arith.mulf %102, %101 : vector<8x128xf32>
    %104 = math.tanh %103 : vector<8x128xf32>
    %cst_39 = arith.constant 5.000000e-01 : f32
    %105 = vector.broadcast %cst_39 : f32 to vector<8x128xf32>
    %106 = arith.mulf %105, %104 : vector<8x128xf32>
    %cst_40 = arith.constant 5.000000e-01 : f32
    %107 = vector.broadcast %cst_40 : f32 to vector<8x128xf32>
    %108 = arith.addf %106, %107 : vector<8x128xf32>
    %109 = vector.extract_strided_slice %100 {offsets = [0, 128], sizes = [8, 128], strides = [1, 1]} : vector<8x512xf32> to vector<8x128xf32>
    %cst_41 = arith.constant 5.000000e-01 : f32
    %110 = vector.broadcast %cst_41 : f32 to vector<8x128xf32>
    %111 = arith.mulf %110, %109 : vector<8x128xf32>
    %112 = math.tanh %111 : vector<8x128xf32>
    %cst_42 = arith.constant 5.000000e-01 : f32
    %113 = vector.broadcast %cst_42 : f32 to vector<8x128xf32>
    %114 = arith.mulf %113, %112 : vector<8x128xf32>
    %cst_43 = arith.constant 5.000000e-01 : f32
    %115 = vector.broadcast %cst_43 : f32 to vector<8x128xf32>
    %116 = arith.addf %114, %115 : vector<8x128xf32>
    %117 = vector.extract_strided_slice %100 {offsets = [0, 256], sizes = [8, 128], strides = [1, 1]} : vector<8x512xf32> to vector<8x128xf32>
    %118 = math.tanh %117 : vector<8x128xf32>
    %119 = vector.extract_strided_slice %100 {offsets = [0, 384], sizes = [8, 128], strides = [1, 1]} : vector<8x512xf32> to vector<8x128xf32>
    %cst_44 = arith.constant 5.000000e-01 : f32
    %120 = vector.broadcast %cst_44 : f32 to vector<8x128xf32>
    %121 = arith.mulf %120, %119 : vector<8x128xf32>
    %122 = math.tanh %121 : vector<8x128xf32>
    %cst_45 = arith.constant 5.000000e-01 : f32
    %123 = vector.broadcast %cst_45 : f32 to vector<8x128xf32>
    %124 = arith.mulf %123, %122 : vector<8x128xf32>
    %cst_46 = arith.constant 5.000000e-01 : f32
    %125 = vector.broadcast %cst_46 : f32 to vector<8x128xf32>
    %126 = arith.addf %124, %125 : vector<8x128xf32>
    %127 = arith.mulf %116, %94 : vector<8x128xf32>
    %128 = arith.mulf %108, %118 : vector<8x128xf32>
    %129 = arith.addf %127, %128 : vector<8x128xf32>
    %130 = math.tanh %129 : vector<8x128xf32>
    %131 = arith.mulf %126, %130 : vector<8x128xf32>
    %132 = vector.extract_strided_slice %2 {offsets = [2, 0, 0], sizes = [1, 8, 1], strides = [1, 1, 1]} : vector<8x8x1xi1> to vector<1x8x1xi1>
    %133 = vector.shape_cast %132 : vector<1x8x1xi1> to vector<8x1xi1>
    %134 = vector.shape_cast %133 : vector<8x1xi1> to vector<8x1xi1>
    %135 = vector.broadcast %134 : vector<8x1xi1> to vector<8x128xi1>
    %136 = arith.select %135, %131, %91 : vector<8x128xi1>, vector<8x128xf32>
    %137 = vector.shape_cast %133 : vector<8x1xi1> to vector<8x1xi1>
    %138 = vector.broadcast %137 : vector<8x1xi1> to vector<8x128xi1>
    %139 = arith.select %138, %129, %94 : vector<8x128xi1>, vector<8x128xf32>
    %140 = arith.truncf %136 : vector<8x128xf32> to vector<8x128xbf16>
    %c0_47 = arith.constant 0 : index
    %c0_48 = arith.constant 0 : index
    %141 = vector.load %arg2[%c0_47, %c0_48] : memref<128x512xbf16, #tpu.memory_space<vmem>>, vector<128x512xbf16>
    %cst_49 = arith.constant dense<0.000000e+00> : vector<8x512xf32>
    %142 = tpu.matmul %140, %141, %cst_49 {dimension_numbers = #tpu.dot_dimension_numbers<[1], [0], [0], [1], [0, 0, 1, 1], [], []>} : vector<8x128xbf16>, vector<128x512xbf16>, vector<8x512xf32> -> vector<8x512xf32>
    %c3 = arith.constant 3 : index
    %c0_50 = arith.constant 0 : index
    %c0_51 = arith.constant 0 : index
    %143 = vector.load %arg0[%c3, %c0_50, %c0_51] : memref<8x8x512xf32, #tpu.memory_space<vmem>>, vector<1x8x512xf32>
    %144 = vector.shape_cast %143 : vector<1x8x512xf32> to vector<8x512xf32>
    %145 = arith.addf %144, %142 : vector<8x512xf32>
    %146 = vector.extract_strided_slice %145 {offsets = [0, 0], sizes = [8, 128], strides = [1, 1]} : vector<8x512xf32> to vector<8x128xf32>
    %cst_52 = arith.constant 5.000000e-01 : f32
    %147 = vector.broadcast %cst_52 : f32 to vector<8x128xf32>
    %148 = arith.mulf %147, %146 : vector<8x128xf32>
    %149 = math.tanh %148 : vector<8x128xf32>
    %cst_53 = arith.constant 5.000000e-01 : f32
    %150 = vector.broadcast %cst_53 : f32 to vector<8x128xf32>
    %151 = arith.mulf %150, %149 : vector<8x128xf32>
    %cst_54 = arith.constant 5.000000e-01 : f32
    %152 = vector.broadcast %cst_54 : f32 to vector<8x128xf32>
    %153 = arith.addf %151, %152 : vector<8x128xf32>
    %154 = vector.extract_strided_slice %145 {offsets = [0, 128], sizes = [8, 128], strides = [1, 1]} : vector<8x512xf32> to vector<8x128xf32>
    %cst_55 = arith.constant 5.000000e-01 : f32
    %155 = vector.broadcast %cst_55 : f32 to vector<8x128xf32>
    %156 = arith.mulf %155, %154 : vector<8x128xf32>
    %157 = math.tanh %156 : vector<8x128xf32>
    %cst_56 = arith.constant 5.000000e-01 : f32
    %158 = vector.broadcast %cst_56 : f32 to vector<8x128xf32>
    %159 = arith.mulf %158, %157 : vector<8x128xf32>
    %cst_57 = arith.constant 5.000000e-01 : f32
    %160 = vector.broadcast %cst_57 : f32 to vector<8x128xf32>
    %161 = arith.addf %159, %160 : vector<8x128xf32>
    %162 = vector.extract_strided_slice %145 {offsets = [0, 256], sizes = [8, 128], strides = [1, 1]} : vector<8x512xf32> to vector<8x128xf32>
    %163 = math.tanh %162 : vector<8x128xf32>
    %164 = vector.extract_strided_slice %145 {offsets = [0, 384], sizes = [8, 128], strides = [1, 1]} : vector<8x512xf32> to vector<8x128xf32>
    %cst_58 = arith.constant 5.000000e-01 : f32
    %165 = vector.broadcast %cst_58 : f32 to vector<8x128xf32>
    %166 = arith.mulf %165, %164 : vector<8x128xf32>
    %167 = math.tanh %166 : vector<8x128xf32>
    %cst_59 = arith.constant 5.000000e-01 : f32
    %168 = vector.broadcast %cst_59 : f32 to vector<8x128xf32>
    %169 = arith.mulf %168, %167 : vector<8x128xf32>
    %cst_60 = arith.constant 5.000000e-01 : f32
    %170 = vector.broadcast %cst_60 : f32 to vector<8x128xf32>
    %171 = arith.addf %169, %170 : vector<8x128xf32>
    %172 = arith.mulf %161, %139 : vector<8x128xf32>
    %173 = arith.mulf %153, %163 : vector<8x128xf32>
    %174 = arith.addf %172, %173 : vector<8x128xf32>
    %175 = math.tanh %174 : vector<8x128xf32>
    %176 = arith.mulf %171, %175 : vector<8x128xf32>
    %177 = vector.extract_strided_slice %2 {offsets = [3, 0, 0], sizes = [1, 8, 1], strides = [1, 1, 1]} : vector<8x8x1xi1> to vector<1x8x1xi1>
    %178 = vector.shape_cast %177 : vector<1x8x1xi1> to vector<8x1xi1>
    %179 = vector.shape_cast %178 : vector<8x1xi1> to vector<8x1xi1>
    %180 = vector.broadcast %179 : vector<8x1xi1> to vector<8x128xi1>
    %181 = arith.select %180, %176, %136 : vector<8x128xi1>, vector<8x128xf32>
    %182 = vector.shape_cast %178 : vector<8x1xi1> to vector<8x1xi1>
    %183 = vector.broadcast %182 : vector<8x1xi1> to vector<8x128xi1>
    %184 = arith.select %183, %174, %139 : vector<8x128xi1>, vector<8x128xf32>
    %185 = arith.truncf %181 : vector<8x128xf32> to vector<8x128xbf16>
    %c0_61 = arith.constant 0 : index
    %c0_62 = arith.constant 0 : index
    %186 = vector.load %arg2[%c0_61, %c0_62] : memref<128x512xbf16, #tpu.memory_space<vmem>>, vector<128x512xbf16>
    %cst_63 = arith.constant dense<0.000000e+00> : vector<8x512xf32>
    %187 = tpu.matmul %185, %186, %cst_63 {dimension_numbers = #tpu.dot_dimension_numbers<[1], [0], [0], [1], [0, 0, 1, 1], [], []>} : vector<8x128xbf16>, vector<128x512xbf16>, vector<8x512xf32> -> vector<8x512xf32>
    %c4 = arith.constant 4 : index
    %c0_64 = arith.constant 0 : index
    %c0_65 = arith.constant 0 : index
    %188 = vector.load %arg0[%c4, %c0_64, %c0_65] : memref<8x8x512xf32, #tpu.memory_space<vmem>>, vector<1x8x512xf32>
    %189 = vector.shape_cast %188 : vector<1x8x512xf32> to vector<8x512xf32>
    %190 = arith.addf %189, %187 : vector<8x512xf32>
    %191 = vector.extract_strided_slice %190 {offsets = [0, 0], sizes = [8, 128], strides = [1, 1]} : vector<8x512xf32> to vector<8x128xf32>
    %cst_66 = arith.constant 5.000000e-01 : f32
    %192 = vector.broadcast %cst_66 : f32 to vector<8x128xf32>
    %193 = arith.mulf %192, %191 : vector<8x128xf32>
    %194 = math.tanh %193 : vector<8x128xf32>
    %cst_67 = arith.constant 5.000000e-01 : f32
    %195 = vector.broadcast %cst_67 : f32 to vector<8x128xf32>
    %196 = arith.mulf %195, %194 : vector<8x128xf32>
    %cst_68 = arith.constant 5.000000e-01 : f32
    %197 = vector.broadcast %cst_68 : f32 to vector<8x128xf32>
    %198 = arith.addf %196, %197 : vector<8x128xf32>
    %199 = vector.extract_strided_slice %190 {offsets = [0, 128], sizes = [8, 128], strides = [1, 1]} : vector<8x512xf32> to vector<8x128xf32>
    %cst_69 = arith.constant 5.000000e-01 : f32
    %200 = vector.broadcast %cst_69 : f32 to vector<8x128xf32>
    %201 = arith.mulf %200, %199 : vector<8x128xf32>
    %202 = math.tanh %201 : vector<8x128xf32>
    %cst_70 = arith.constant 5.000000e-01 : f32
    %203 = vector.broadcast %cst_70 : f32 to vector<8x128xf32>
    %204 = arith.mulf %203, %202 : vector<8x128xf32>
    %cst_71 = arith.constant 5.000000e-01 : f32
    %205 = vector.broadcast %cst_71 : f32 to vector<8x128xf32>
    %206 = arith.addf %204, %205 : vector<8x128xf32>
    %207 = vector.extract_strided_slice %190 {offsets = [0, 256], sizes = [8, 128], strides = [1, 1]} : vector<8x512xf32> to vector<8x128xf32>
    %208 = math.tanh %207 : vector<8x128xf32>
    %209 = vector.extract_strided_slice %190 {offsets = [0, 384], sizes = [8, 128], strides = [1, 1]} : vector<8x512xf32> to vector<8x128xf32>
    %cst_72 = arith.constant 5.000000e-01 : f32
    %210 = vector.broadcast %cst_72 : f32 to vector<8x128xf32>
    %211 = arith.mulf %210, %209 : vector<8x128xf32>
    %212 = math.tanh %211 : vector<8x128xf32>
    %cst_73 = arith.constant 5.000000e-01 : f32
    %213 = vector.broadcast %cst_73 : f32 to vector<8x128xf32>
    %214 = arith.mulf %213, %212 : vector<8x128xf32>
    %cst_74 = arith.constant 5.000000e-01 : f32
    %215 = vector.broadcast %cst_74 : f32 to vector<8x128xf32>
    %216 = arith.addf %214, %215 : vector<8x128xf32>
    %217 = arith.mulf %206, %184 : vector<8x128xf32>
    %218 = arith.mulf %198, %208 : vector<8x128xf32>
    %219 = arith.addf %217, %218 : vector<8x128xf32>
    %220 = math.tanh %219 : vector<8x128xf32>
    %221 = arith.mulf %216, %220 : vector<8x128xf32>
    %222 = vector.extract_strided_slice %2 {offsets = [4, 0, 0], sizes = [1, 8, 1], strides = [1, 1, 1]} : vector<8x8x1xi1> to vector<1x8x1xi1>
    %223 = vector.shape_cast %222 : vector<1x8x1xi1> to vector<8x1xi1>
    %224 = vector.shape_cast %223 : vector<8x1xi1> to vector<8x1xi1>
    %225 = vector.broadcast %224 : vector<8x1xi1> to vector<8x128xi1>
    %226 = arith.select %225, %221, %181 : vector<8x128xi1>, vector<8x128xf32>
    %227 = vector.shape_cast %223 : vector<8x1xi1> to vector<8x1xi1>
    %228 = vector.broadcast %227 : vector<8x1xi1> to vector<8x128xi1>
    %229 = arith.select %228, %219, %184 : vector<8x128xi1>, vector<8x128xf32>
    %230 = arith.truncf %226 : vector<8x128xf32> to vector<8x128xbf16>
    %c0_75 = arith.constant 0 : index
    %c0_76 = arith.constant 0 : index
    %231 = vector.load %arg2[%c0_75, %c0_76] : memref<128x512xbf16, #tpu.memory_space<vmem>>, vector<128x512xbf16>
    %cst_77 = arith.constant dense<0.000000e+00> : vector<8x512xf32>
    %232 = tpu.matmul %230, %231, %cst_77 {dimension_numbers = #tpu.dot_dimension_numbers<[1], [0], [0], [1], [0, 0, 1, 1], [], []>} : vector<8x128xbf16>, vector<128x512xbf16>, vector<8x512xf32> -> vector<8x512xf32>
    %c5 = arith.constant 5 : index
    %c0_78 = arith.constant 0 : index
    %c0_79 = arith.constant 0 : index
    %233 = vector.load %arg0[%c5, %c0_78, %c0_79] : memref<8x8x512xf32, #tpu.memory_space<vmem>>, vector<1x8x512xf32>
    %234 = vector.shape_cast %233 : vector<1x8x512xf32> to vector<8x512xf32>
    %235 = arith.addf %234, %232 : vector<8x512xf32>
    %236 = vector.extract_strided_slice %235 {offsets = [0, 0], sizes = [8, 128], strides = [1, 1]} : vector<8x512xf32> to vector<8x128xf32>
    %cst_80 = arith.constant 5.000000e-01 : f32
    %237 = vector.broadcast %cst_80 : f32 to vector<8x128xf32>
    %238 = arith.mulf %237, %236 : vector<8x128xf32>
    %239 = math.tanh %238 : vector<8x128xf32>
    %cst_81 = arith.constant 5.000000e-01 : f32
    %240 = vector.broadcast %cst_81 : f32 to vector<8x128xf32>
    %241 = arith.mulf %240, %239 : vector<8x128xf32>
    %cst_82 = arith.constant 5.000000e-01 : f32
    %242 = vector.broadcast %cst_82 : f32 to vector<8x128xf32>
    %243 = arith.addf %241, %242 : vector<8x128xf32>
    %244 = vector.extract_strided_slice %235 {offsets = [0, 128], sizes = [8, 128], strides = [1, 1]} : vector<8x512xf32> to vector<8x128xf32>
    %cst_83 = arith.constant 5.000000e-01 : f32
    %245 = vector.broadcast %cst_83 : f32 to vector<8x128xf32>
    %246 = arith.mulf %245, %244 : vector<8x128xf32>
    %247 = math.tanh %246 : vector<8x128xf32>
    %cst_84 = arith.constant 5.000000e-01 : f32
    %248 = vector.broadcast %cst_84 : f32 to vector<8x128xf32>
    %249 = arith.mulf %248, %247 : vector<8x128xf32>
    %cst_85 = arith.constant 5.000000e-01 : f32
    %250 = vector.broadcast %cst_85 : f32 to vector<8x128xf32>
    %251 = arith.addf %249, %250 : vector<8x128xf32>
    %252 = vector.extract_strided_slice %235 {offsets = [0, 256], sizes = [8, 128], strides = [1, 1]} : vector<8x512xf32> to vector<8x128xf32>
    %253 = math.tanh %252 : vector<8x128xf32>
    %254 = vector.extract_strided_slice %235 {offsets = [0, 384], sizes = [8, 128], strides = [1, 1]} : vector<8x512xf32> to vector<8x128xf32>
    %cst_86 = arith.constant 5.000000e-01 : f32
    %255 = vector.broadcast %cst_86 : f32 to vector<8x128xf32>
    %256 = arith.mulf %255, %254 : vector<8x128xf32>
    %257 = math.tanh %256 : vector<8x128xf32>
    %cst_87 = arith.constant 5.000000e-01 : f32
    %258 = vector.broadcast %cst_87 : f32 to vector<8x128xf32>
    %259 = arith.mulf %258, %257 : vector<8x128xf32>
    %cst_88 = arith.constant 5.000000e-01 : f32
    %260 = vector.broadcast %cst_88 : f32 to vector<8x128xf32>
    %261 = arith.addf %259, %260 : vector<8x128xf32>
    %262 = arith.mulf %251, %229 : vector<8x128xf32>
    %263 = arith.mulf %243, %253 : vector<8x128xf32>
    %264 = arith.addf %262, %263 : vector<8x128xf32>
    %265 = math.tanh %264 : vector<8x128xf32>
    %266 = arith.mulf %261, %265 : vector<8x128xf32>
    %267 = vector.extract_strided_slice %2 {offsets = [5, 0, 0], sizes = [1, 8, 1], strides = [1, 1, 1]} : vector<8x8x1xi1> to vector<1x8x1xi1>
    %268 = vector.shape_cast %267 : vector<1x8x1xi1> to vector<8x1xi1>
    %269 = vector.shape_cast %268 : vector<8x1xi1> to vector<8x1xi1>
    %270 = vector.broadcast %269 : vector<8x1xi1> to vector<8x128xi1>
    %271 = arith.select %270, %266, %226 : vector<8x128xi1>, vector<8x128xf32>
    %272 = vector.shape_cast %268 : vector<8x1xi1> to vector<8x1xi1>
    %273 = vector.broadcast %272 : vector<8x1xi1> to vector<8x128xi1>
    %274 = arith.select %273, %264, %229 : vector<8x128xi1>, vector<8x128xf32>
    %275 = arith.truncf %271 : vector<8x128xf32> to vector<8x128xbf16>
    %c0_89 = arith.constant 0 : index
    %c0_90 = arith.constant 0 : index
    %276 = vector.load %arg2[%c0_89, %c0_90] : memref<128x512xbf16, #tpu.memory_space<vmem>>, vector<128x512xbf16>
    %cst_91 = arith.constant dense<0.000000e+00> : vector<8x512xf32>
    %277 = tpu.matmul %275, %276, %cst_91 {dimension_numbers = #tpu.dot_dimension_numbers<[1], [0], [0], [1], [0, 0, 1, 1], [], []>} : vector<8x128xbf16>, vector<128x512xbf16>, vector<8x512xf32> -> vector<8x512xf32>
    %c6 = arith.constant 6 : index
    %c0_92 = arith.constant 0 : index
    %c0_93 = arith.constant 0 : index
    %278 = vector.load %arg0[%c6, %c0_92, %c0_93] : memref<8x8x512xf32, #tpu.memory_space<vmem>>, vector<1x8x512xf32>
    %279 = vector.shape_cast %278 : vector<1x8x512xf32> to vector<8x512xf32>
    %280 = arith.addf %279, %277 : vector<8x512xf32>
    %281 = vector.extract_strided_slice %280 {offsets = [0, 0], sizes = [8, 128], strides = [1, 1]} : vector<8x512xf32> to vector<8x128xf32>
    %cst_94 = arith.constant 5.000000e-01 : f32
    %282 = vector.broadcast %cst_94 : f32 to vector<8x128xf32>
    %283 = arith.mulf %282, %281 : vector<8x128xf32>
    %284 = math.tanh %283 : vector<8x128xf32>
    %cst_95 = arith.constant 5.000000e-01 : f32
    %285 = vector.broadcast %cst_95 : f32 to vector<8x128xf32>
    %286 = arith.mulf %285, %284 : vector<8x128xf32>
    %cst_96 = arith.constant 5.000000e-01 : f32
    %287 = vector.broadcast %cst_96 : f32 to vector<8x128xf32>
    %288 = arith.addf %286, %287 : vector<8x128xf32>
    %289 = vector.extract_strided_slice %280 {offsets = [0, 128], sizes = [8, 128], strides = [1, 1]} : vector<8x512xf32> to vector<8x128xf32>
    %cst_97 = arith.constant 5.000000e-01 : f32
    %290 = vector.broadcast %cst_97 : f32 to vector<8x128xf32>
    %291 = arith.mulf %290, %289 : vector<8x128xf32>
    %292 = math.tanh %291 : vector<8x128xf32>
    %cst_98 = arith.constant 5.000000e-01 : f32
    %293 = vector.broadcast %cst_98 : f32 to vector<8x128xf32>
    %294 = arith.mulf %293, %292 : vector<8x128xf32>
    %cst_99 = arith.constant 5.000000e-01 : f32
    %295 = vector.broadcast %cst_99 : f32 to vector<8x128xf32>
    %296 = arith.addf %294, %295 : vector<8x128xf32>
    %297 = vector.extract_strided_slice %280 {offsets = [0, 256], sizes = [8, 128], strides = [1, 1]} : vector<8x512xf32> to vector<8x128xf32>
    %298 = math.tanh %297 : vector<8x128xf32>
    %299 = vector.extract_strided_slice %280 {offsets = [0, 384], sizes = [8, 128], strides = [1, 1]} : vector<8x512xf32> to vector<8x128xf32>
    %cst_100 = arith.constant 5.000000e-01 : f32
    %300 = vector.broadcast %cst_100 : f32 to vector<8x128xf32>
    %301 = arith.mulf %300, %299 : vector<8x128xf32>
    %302 = math.tanh %301 : vector<8x128xf32>
    %cst_101 = arith.constant 5.000000e-01 : f32
    %303 = vector.broadcast %cst_101 : f32 to vector<8x128xf32>
    %304 = arith.mulf %303, %302 : vector<8x128xf32>
    %cst_102 = arith.constant 5.000000e-01 : f32
    %305 = vector.broadcast %cst_102 : f32 to vector<8x128xf32>
    %306 = arith.addf %304, %305 : vector<8x128xf32>
    %307 = arith.mulf %296, %274 : vector<8x128xf32>
    %308 = arith.mulf %288, %298 : vector<8x128xf32>
    %309 = arith.addf %307, %308 : vector<8x128xf32>
    %310 = math.tanh %309 : vector<8x128xf32>
    %311 = arith.mulf %306, %310 : vector<8x128xf32>
    %312 = vector.extract_strided_slice %2 {offsets = [6, 0, 0], sizes = [1, 8, 1], strides = [1, 1, 1]} : vector<8x8x1xi1> to vector<1x8x1xi1>
    %313 = vector.shape_cast %312 : vector<1x8x1xi1> to vector<8x1xi1>
    %314 = vector.shape_cast %313 : vector<8x1xi1> to vector<8x1xi1>
    %315 = vector.broadcast %314 : vector<8x1xi1> to vector<8x128xi1>
    %316 = arith.select %315, %311, %271 : vector<8x128xi1>, vector<8x128xf32>
    %317 = vector.shape_cast %313 : vector<8x1xi1> to vector<8x1xi1>
    %318 = vector.broadcast %317 : vector<8x1xi1> to vector<8x128xi1>
    %319 = arith.select %318, %309, %274 : vector<8x128xi1>, vector<8x128xf32>
    %320 = arith.truncf %316 : vector<8x128xf32> to vector<8x128xbf16>
    %c0_103 = arith.constant 0 : index
    %c0_104 = arith.constant 0 : index
    %321 = vector.load %arg2[%c0_103, %c0_104] : memref<128x512xbf16, #tpu.memory_space<vmem>>, vector<128x512xbf16>
    %cst_105 = arith.constant dense<0.000000e+00> : vector<8x512xf32>
    %322 = tpu.matmul %320, %321, %cst_105 {dimension_numbers = #tpu.dot_dimension_numbers<[1], [0], [0], [1], [0, 0, 1, 1], [], []>} : vector<8x128xbf16>, vector<128x512xbf16>, vector<8x512xf32> -> vector<8x512xf32>
    %c7 = arith.constant 7 : index
    %c0_106 = arith.constant 0 : index
    %c0_107 = arith.constant 0 : index
    %323 = vector.load %arg0[%c7, %c0_106, %c0_107] : memref<8x8x512xf32, #tpu.memory_space<vmem>>, vector<1x8x512xf32>
    %324 = vector.shape_cast %323 : vector<1x8x512xf32> to vector<8x512xf32>
    %325 = arith.addf %324, %322 : vector<8x512xf32>
    %326 = vector.extract_strided_slice %325 {offsets = [0, 0], sizes = [8, 128], strides = [1, 1]} : vector<8x512xf32> to vector<8x128xf32>
    %cst_108 = arith.constant 5.000000e-01 : f32
    %327 = vector.broadcast %cst_108 : f32 to vector<8x128xf32>
    %328 = arith.mulf %327, %326 : vector<8x128xf32>
    %329 = math.tanh %328 : vector<8x128xf32>
    %cst_109 = arith.constant 5.000000e-01 : f32
    %330 = vector.broadcast %cst_109 : f32 to vector<8x128xf32>
    %331 = arith.mulf %330, %329 : vector<8x128xf32>
    %cst_110 = arith.constant 5.000000e-01 : f32
    %332 = vector.broadcast %cst_110 : f32 to vector<8x128xf32>
    %333 = arith.addf %331, %332 : vector<8x128xf32>
    %334 = vector.extract_strided_slice %325 {offsets = [0, 128], sizes = [8, 128], strides = [1, 1]} : vector<8x512xf32> to vector<8x128xf32>
    %cst_111 = arith.constant 5.000000e-01 : f32
    %335 = vector.broadcast %cst_111 : f32 to vector<8x128xf32>
    %336 = arith.mulf %335, %334 : vector<8x128xf32>
    %337 = math.tanh %336 : vector<8x128xf32>
    %cst_112 = arith.constant 5.000000e-01 : f32
    %338 = vector.broadcast %cst_112 : f32 to vector<8x128xf32>
    %339 = arith.mulf %338, %337 : vector<8x128xf32>
    %cst_113 = arith.constant 5.000000e-01 : f32
    %340 = vector.broadcast %cst_113 : f32 to vector<8x128xf32>
    %341 = arith.addf %339, %340 : vector<8x128xf32>
    %342 = vector.extract_strided_slice %325 {offsets = [0, 256], sizes = [8, 128], strides = [1, 1]} : vector<8x512xf32> to vector<8x128xf32>
    %343 = math.tanh %342 : vector<8x128xf32>
    %344 = vector.extract_strided_slice %325 {offsets = [0, 384], sizes = [8, 128], strides = [1, 1]} : vector<8x512xf32> to vector<8x128xf32>
    %cst_114 = arith.constant 5.000000e-01 : f32
    %345 = vector.broadcast %cst_114 : f32 to vector<8x128xf32>
    %346 = arith.mulf %345, %344 : vector<8x128xf32>
    %347 = math.tanh %346 : vector<8x128xf32>
    %cst_115 = arith.constant 5.000000e-01 : f32
    %348 = vector.broadcast %cst_115 : f32 to vector<8x128xf32>
    %349 = arith.mulf %348, %347 : vector<8x128xf32>
    %cst_116 = arith.constant 5.000000e-01 : f32
    %350 = vector.broadcast %cst_116 : f32 to vector<8x128xf32>
    %351 = arith.addf %349, %350 : vector<8x128xf32>
    %352 = arith.mulf %341, %319 : vector<8x128xf32>
    %353 = arith.mulf %333, %343 : vector<8x128xf32>
    %354 = arith.addf %352, %353 : vector<8x128xf32>
    %355 = math.tanh %354 : vector<8x128xf32>
    %356 = arith.mulf %351, %355 : vector<8x128xf32>
    %357 = vector.extract_strided_slice %2 {offsets = [7, 0, 0], sizes = [1, 8, 1], strides = [1, 1, 1]} : vector<8x8x1xi1> to vector<1x8x1xi1>
    %358 = vector.shape_cast %357 : vector<1x8x1xi1> to vector<8x1xi1>
    %359 = vector.shape_cast %358 : vector<8x1xi1> to vector<8x1xi1>
    %360 = vector.broadcast %359 : vector<8x1xi1> to vector<8x128xi1>
    %361 = arith.select %360, %356, %316 : vector<8x128xi1>, vector<8x128xf32>
    %c0_117 = arith.constant 0 : index
    %c0_118 = arith.constant 0 : index
    %362 = vector.load %arg3[%c0_117, %c0_118] : memref<128x128xf32, #tpu.memory_space<vmem>>, vector<128x128xf32>
    %cst_119 = arith.constant dense<0.000000e+00> : vector<8x128xf32>
    %363 = tpu.matmul %361, %362, %cst_119 {dimension_numbers = #tpu.dot_dimension_numbers<[1], [0], [0], [1], [0, 0, 1, 1], [], []>} : vector<8x128xf32>, vector<128x128xf32>, vector<8x128xf32> -> vector<8x128xf32>
    %c0_120 = arith.constant 0 : index
    %c0_121 = arith.constant 0 : index
    %364 = vector.load %arg4[%c0_120, %c0_121] : memref<1x128xf32, #tpu.memory_space<vmem>>, vector<1x128xf32>
    %365 = vector.broadcast %364 : vector<1x128xf32> to vector<8x128xf32>
    %366 = arith.addf %363, %365 : vector<8x128xf32>
    %cst_122 = arith.constant 5.000000e-01 : f32
    %367 = vector.broadcast %cst_122 : f32 to vector<8x128xf32>
    %368 = arith.mulf %367, %366 : vector<8x128xf32>
    %369 = math.tanh %368 : vector<8x128xf32>
    %cst_123 = arith.constant 5.000000e-01 : f32
    %370 = vector.broadcast %cst_123 : f32 to vector<8x128xf32>
    %371 = arith.mulf %370, %369 : vector<8x128xf32>
    %cst_124 = arith.constant 5.000000e-01 : f32
    %372 = vector.broadcast %cst_124 : f32 to vector<8x128xf32>
    %373 = arith.addf %371, %372 : vector<8x128xf32>
    %c0_125 = arith.constant 0 : index
    %c0_126 = arith.constant 0 : index
    %374 = vector.load %arg5[%c0_125, %c0_126] : memref<8x128xf32, #tpu.memory_space<vmem>>, vector<8x128xf32>
    tpu.vector_store %arg5[%c0_125, %c0_126], %373 {strides = array<i32>} : memref<8x128xf32, #tpu.memory_space<vmem>>, vector<8x128xf32>,
    return
  }
}

</mosaic_0001>

<bundles_post_ra>
// kernel: rnn_forward.1
= control target key start
LH: loop header
LB: loop body
LE: loop exit
PB: predicated region body
PF: predicated region fallthrough
CT: control target
= control target key end

     0   :  { %v1575_v1 = vmov 0   ;;  %s2390_s2 = inlined_call_operand.vmem [shape: bf16[128,512], index: 2, kind: input, shape index: {}]   ;;  %s2391_s1 = inlined_call_operand.vmem [shape: f32[8,8,1], index: 1, kind: input, shape index: {}]   ;;  %s2392_s0 = inlined_call_operand.vmem [shape: f32[8,8,512], index: 0, kind: input, shape index: {}]   ;;  %s2393_s3 = inlined_call_operand.vmem [shape: f32[128,128], index: 3, kind: input, shape index: {}]   ;;  %s2394_s4 = inlined_call_operand.vmem [shape: f32[1,128], index: 4, kind: input, shape index: {}]   ;;  %s2395_s5 = inlined_call_operand.vmem [shape: f32[8,128], index: 5, kind: output, shape index: {}]  }
   0x1   :  { %v1612_v0 = vld [vmem:[%s2390_s2 + $0x4] ss:$16 sps:$4 sm:$0xff]   ;;  %261 = vmatprep.mubr.bf16.mxu0 %v1575_v1  ;;  %302 = vmatprep.mubr.bf16.mxu1 %v1575_v1  ;;  %v1619_v2 = vld [vmem:[%s2390_s2] ss:$16 sps:$4 sm:$0xff]   ;;  %v1633_v4 = vld [vmem:[%s2390_s2 + $0xc] ss:$16 sps:$4 sm:$0xff]  }
   0x2   :  { %1411 = vset.pattern.permute.xlu0 %v1575_v1  ;;  %1412 = vset.pattern.permute.xlu1 %v1575_v1  ;;  %v1627_v3 = vld [vmem:[%s2390_s2 + $0x24] ss:$16 sps:$4 sm:$0xff]   ;;  %v1638_v5 = vld [vmem:[%s2390_s2 + $0x20] ss:$16 sps:$4 sm:$0xff]   ;;  %v1643_v6 = vld [vmem:[%s2390_s2 + $0x8] ss:$16 sps:$4 sm:$0xff]  }
   0x3   :  { %229 = vmatprep.subr.bf16.mxu0 %v1612_v0  ;;  %v1649_v7 = vld [vmem:[%s2390_s2 + $0x44] ss:$16 sps:$4 sm:$0xff]   ;;  %270 = vmatprep.subr.bf16.mxu1 %v1633_v4  ;;  %v1655_v8 = vld [vmem:[%s2390_s2 + $0x2c] ss:$16 sps:$4 sm:$0xff]   ;;  %v1661_v9 = vld [vmem:[%s2390_s2 + $0x28] ss:$16 sps:$4 sm:$0xff]  }
   0x4   :  { %230 = vmatpush1.bf16.msra.mxu0 %v1619_v2  ;;  %271 = vmatpush1.bf16.msra.mxu1 %v1643_v6  ;;  %v1668_v10 = vld [vmem:[%s2390_s2 + $0x40] ss:$16 sps:$4 sm:$0xff]   ;;  %v1674_v11 = vld [vmem:[%s2390_s2 + $0x64] ss:$16 sps:$4 sm:$0xff]   ;;  %v1679_v12 = vld [vmem:[%s2390_s2 + $0x4c] ss:$16 sps:$4 sm:$0xff]  }
   0x5   :  { %231 = vmatprep.subr.bf16.mxu0 %v1627_v3  ;;  %272 = vmatprep.subr.bf16.mxu1 %v1655_v8  ;;  %v1685_v13 = vld [vmem:[%s2390_s2 + $0x48] ss:$16 sps:$4 sm:$0xff]   ;;  %v1692_v14 = vld [vmem:[%s2390_s2 + $0x60] ss:$16 sps:$4 sm:$0xff]   ;;  %v1697_v15 = vld [vmem:[%s2390_s2 + $0x6c] ss:$16 sps:$4 sm:$0xff]  }
   0x6   :  { %v1703_v16 = vld [vmem:[%s2390_s2 + $0x84] ss:$16 sps:$4 sm:$0xff]   ;;  %v1709_v17 = vld [vmem:[%s2390_s2 + $0x80] ss:$16 sps:$4 sm:$0xff]   ;;  %v1714_v18 = vld [vmem:[%s2390_s2 + $0x68] ss:$16 sps:$4 sm:$0xff]  }
   0x7   :  { %v1721_v19 = vld [vmem:[%s2390_s2 + $0x8c] ss:$16 sps:$4 sm:$0xff]   ;;  %v1727_v20 = vld [vmem:[%s2390_s2 + $0xa4] ss:$16 sps:$4 sm:$0xff]   ;;  %v1733_v21 = vld [vmem:[%s2390_s2 + $0x88] ss:$16 sps:$4 sm:$0xff]  }
   0x8   :  { %232 = vmatpush1.bf16.msra.mxu0 %v1638_v5  ;;  %273 = vmatpush1.bf16.msra.mxu1 %v1661_v9  ;;  %v1740_v22 = vld [vmem:[%s2390_s2 + $0xa0] ss:$16 sps:$4 sm:$0xff]   ;;  %v1745_v23 = vld [vmem:[%s2390_s2 + $0xac] ss:$16 sps:$4 sm:$0xff]   ;;  %v1751_v24 = vld [vmem:[%s2390_s2 + $0xc4] ss:$16 sps:$4 sm:$0xff]  }
   0x9   :  { %233 = vmatprep.subr.bf16.mxu0 %v1649_v7  ;;  %274 = vmatprep.subr.bf16.mxu1 %v1679_v12  ;;  %v21_v25 = vld [vmem:[%s2391_s1] sm:$0xff]  ;;  %v22_v26 = vld [vmem:[%s2391_s1 + $0x8] sm:$0xff]  ;;  %v27_v37 = vld [vmem:[%s2391_s1 + $0x30] sm:$0xff] }
   0xa   :  { %v1763_v27 = vld [vmem:[%s2390_s2 + $0xa8] ss:$16 sps:$4 sm:$0xff]   ;;  %vm29_vm0 = vcmp.gt.f32.partialorder %v21_v25, 0.0  ;;  %vm30_vm1 = vcmp.gt.f32.partialorder %v22_v26, 0.0  ;;  %v1770_v28 = vld [vmem:[%s2390_s2 + $0xc0] ss:$16 sps:$4 sm:$0xff]  }
   0xb   :  { %v1775_v29 = vld [vmem:[%s2390_s2 + $0xcc] ss:$16 sps:$4 sm:$0xff]   ;;  %v337_v30 = vsel %vm29_vm0, 1, %v1575_v1  ;;  %v25_v31 = vld [vmem:[%s2391_s1 + $0x20] sm:$0xff]  ;;  %v454_v33 = vsel %vm30_vm1, 1, %v1575_v1  ;;  %vm35_vm3 = vcmp.gt.f32.partialorder %v27_v37, 0.0 }
   0xc   :  { %234 = vmatpush1.bf16.msra.mxu0 %v1668_v10  ;;  %275 = vmatpush1.bf16.msra.mxu1 %v1685_v13  ;;  %v1785_v32 = vld [vmem:[%s2390_s2 + $0xe4] ss:$16 sps:$4 sm:$0xff]   ;;  %v1792_v34 = vld [vmem:[%s2390_s2 + $0xc8] ss:$16 sps:$4 sm:$0xff]   ;;  %vm33_vm2 = vcmp.gt.f32.partialorder %v25_v31, 0.0  ;;  %v1039_v40 = vsel %vm35_vm3, 1, %v1575_v1 }
   0xd   :  { %235 = vmatprep.subr.bf16.mxu0 %v1674_v11  ;;  %276 = vmatprep.subr.bf16.mxu1 %v1697_v15  ;;  %v1799_v35 = vld [vmem:[%s2390_s2 + $0xe0] ss:$16 sps:$4 sm:$0xff]   ;;  %v1804_v36 = vld [vmem:[%s2390_s2 + $0xec] ss:$16 sps:$4 sm:$0xff]   ;;  %v805_v38 = vsel %vm33_vm2, 1, %v1575_v1  ;;  %vm1577_vm0 = vmmov 0  }
   0xe   :  { %339 = vperm.xlu0 %1411, %v337_v30   ;;  %v1815_v39 = vld [vmem:[%s2390_s2 + $0xe8] ss:$16 sps:$4 sm:$0xff]   ;;  %v311_v41 = vld [vmem:[%s2392_s0] sm:$0xff]  ;;  %v313_v46 = vld [vmem:[%s2392_s0 + $0x10] sm:$0xff] }
   0xf   :  { %v312_v42 = vld [vmem:[%s2392_s0 + $0x8] sm:$0xff]  ;;  %v314_v56 = vld [vmem:[%s2392_s0 + $0x18] sm:$0xff] }
  0x10   :  { %236 = vmatpush1.bf16.msra.mxu0 %v1692_v14  ;;  %277 = vmatpush1.bf16.msra.mxu1 %v1714_v18 }
  0x11   :  { %237 = vmatprep.subr.bf16.mxu0 %v1703_v16  ;;  %278 = vmatprep.subr.bf16.mxu1 %v1721_v19 }
  0x12   :  { %456 = vperm.xlu0 %1411, %v454_v33  }
  0x14   :  { %238 = vmatpush1.bf16.msra.mxu0 %v1709_v17  ;;  %279 = vmatpush1.bf16.msra.mxu1 %v1733_v21 }
  0x15   :  { %239 = vmatprep.subr.bf16.mxu0 %v1727_v20  ;;  %280 = vmatprep.subr.bf16.mxu1 %v1745_v23 }
  0x16   :  { %807 = vperm.xlu0 %1411, %v805_v38  }
  0x18   :  { %240 = vmatpush1.bf16.msra.mxu0 %v1740_v22  ;;  %281 = vmatpush1.bf16.msra.mxu1 %v1763_v27 }
  0x19   :  { %241 = vmatprep.subr.bf16.mxu0 %v1751_v24  ;;  %282 = vmatprep.subr.bf16.mxu1 %v1775_v29 }
  0x1a   :  { %1041 = vperm.xlu0 %1411, %v1039_v40  }
  0x1c   :  { %242 = vmatpush1.bf16.msra.mxu0 %v1770_v28  ;;  %283 = vmatpush1.bf16.msra.mxu1 %v1792_v34 }
  0x1d   :  { %243 = vmatprep.subr.bf16.mxu0 %v1785_v32  ;;  %284 = vmatprep.subr.bf16.mxu1 %v1804_v36 }
  0x20   :  { %244 = vmatpush1.bf16.msra.mxu0 %v1799_v35  ;;  %285 = vmatpush1.bf16.msra.mxu1 %v1815_v39 }
  0x21   :  { %345 = vmatprep.subr.bf16.mxu0 %v1612_v0  ;;  %386 = vmatprep.subr.bf16.mxu1 %v1633_v4 }
  0x23   :  { %262 = vmatmul.mubr.bf16.vlgmr.msra.gmra.mrb[0].mxu0 %v1575_v1  ;;  %303 = vmatmul.mubr.bf16.vlgmr.msra.gmra.mrb[0].mxu1 %v1575_v1 }
  0x24   :  { %346 = vmatpush1.bf16.msra.mxu0 %v1619_v2  ;;  %377 = vmatprep.mubr.bf16.mxu0 %v1575_v1 }
  0x25   :  { %347 = vmatprep.subr.bf16.mxu0 %v1627_v3  ;;  %387 = vmatpush1.bf16.msra.mxu1 %v1643_v6 }
  0x26   :  { %418 = vmatprep.mubr.bf16.mxu1 %v1575_v1  ;;  %388 = vmatprep.subr.bf16.mxu1 %v1655_v8 }
  0x28   :  { %348 = vmatpush1.bf16.msra.mxu0 %v1638_v5 }
  0x29   :  { %349 = vmatprep.subr.bf16.mxu0 %v1649_v7  ;;  %389 = vmatpush1.bf16.msra.mxu1 %v1661_v9 }
  0x2a   :  { %390 = vmatprep.subr.bf16.mxu1 %v1679_v12 }
  0x2c   :  { %350 = vmatpush1.bf16.msra.mxu0 %v1668_v10 }
  0x2d   :  { %351 = vmatprep.subr.bf16.mxu0 %v1674_v11  ;;  %391 = vmatpush1.bf16.msra.mxu1 %v1685_v13 }
  0x2e   :  { %392 = vmatprep.subr.bf16.mxu1 %v1697_v15 }
  0x30   :  { %352 = vmatpush1.bf16.msra.mxu0 %v1692_v14 }
  0x31   :  { %353 = vmatprep.subr.bf16.mxu0 %v1703_v16  ;;  %393 = vmatpush1.bf16.msra.mxu1 %v1714_v18 }
  0x32   :  { %394 = vmatprep.subr.bf16.mxu1 %v1721_v19 }
  0x34   :  { %354 = vmatpush1.bf16.msra.mxu0 %v1709_v17 }
  0x35   :  { %355 = vmatprep.subr.bf16.mxu0 %v1727_v20  ;;  %395 = vmatpush1.bf16.msra.mxu1 %v1733_v21 }
  0x36   :  { %396 = vmatprep.subr.bf16.mxu1 %v1745_v23 }
  0x38   :  { %356 = vmatpush1.bf16.msra.mxu0 %v1740_v22 }
  0x39   :  { %357 = vmatprep.subr.bf16.mxu0 %v1751_v24  ;;  %397 = vmatpush1.bf16.msra.mxu1 %v1763_v27 }
  0x3a   :  { %398 = vmatprep.subr.bf16.mxu1 %v1775_v29 }
  0x3c   :  { %358 = vmatpush1.bf16.msra.mxu0 %v1770_v28 }
  0x3d   :  { %359 = vmatprep.subr.bf16.mxu0 %v1785_v32  ;;  %399 = vmatpush1.bf16.msra.mxu1 %v1792_v34 }
  0x3e   :  { %400 = vmatprep.subr.bf16.mxu1 %v1804_v36 }
  0x40   :  { %360 = vmatpush1.bf16.msra.mxu0 %v1799_v35 }
  0x41   :  { %462 = vmatprep.subr.bf16.mxu0 %v1612_v0  ;;  %401 = vmatpush1.bf16.msra.mxu1 %v1815_v39 }
  0x42   :  { %503 = vmatprep.subr.bf16.mxu1 %v1633_v4 }
  0xf6   :  { %v263_v43 = vpop.f32.mrb[0].mxu0  ;;  %v304_v51 = vpop.f32.mrb[0].mxu1 }
  0xf7   :  { %v315_v44 = vadd.f32 %v311_v41, %v263_v43  ;;  %v265_v45 = vpop.f32.mrb[1].mxu0  ;;  %v317_v53 = vadd.f32 %v313_v46, %v304_v51  ;;  %v306_v54 = vpop.f32.mrb[1].mxu1  ;;  %v23_v46 = vld [vmem:[%s2391_s1 + $0x10] sm:$0xff]  ;;  %v28_v51 = vld [vmem:[%s2391_s1 + $0x38] sm:$0xff] }
  0xf8   :  { %v316_v47 = vadd.f32 %v312_v42, %v265_v45  ;;  %v267_v48 = vpop.f32.mrb[2].mxu0  ;;  %v308_v55 = vpop.f32.mrb[2].mxu1  ;;  %v318_v58 = vadd.f32 %v314_v56, %v306_v54  ;;  %vm31_vm6 = vcmp.gt.f32.partialorder %v23_v46, 0.0  ;;  %vm36_vm9 = vcmp.gt.f32.partialorder %v28_v51, 0.0  ;;  %v1302_v54 = vld [vmem:[%s2392_s0 + $0x20] sm:$0xff] }
  0xf9   :  { %v319_v49 = vmul.f32 0.5, %v315_v44  ;;  %v268_v50 = vpop.f32.mrb[3].mxu0  ;;  %v309_v57 = vpop.f32.mrb[3].mxu1  ;;  %v571_v48 = vsel %vm31_vm6, 1, %v1575_v1  ;;  %v1303_v55 = vld [vmem:[%s2392_s0 + $0x28] sm:$0xff] }
  0xfa   :  { %v323_v52 = vmul.f32 0.5, %v316_v47  ;;  %v328_v59 = vmul.f32 0.5, %v318_v58  ;;  %v1874_v41 = vpop.permute.xlu0 %339  ;;  %v24_v47 = vld [vmem:[%s2391_s1 + $0x18] sm:$0xff]  ;;  %573 = vperm.xlu1 %1412, %v571_v48  }
  0xfb   :  { %1461 = vtanh.f32 %v319_v49  ;;  %vm341_vm4 = vcmp.eq.s32.totalorder %v1874_v41, 1  ;;  %vm32_vm7 = vcmp.gt.f32.partialorder %v24_v47, 0.0  ;;  %v26_v49 = vld [vmem:[%s2391_s1 + $0x28] sm:$0xff]  ;;  %v1306_v41 = vld [vmem:[%s2392_s0 + $0x40] sm:$0xff] }
  0xfc   :  { %1463 = vtanh.f32 %v323_v52  ;;  %vm1296_vm5 = vmpackc.low %vm341_vm4, %vm341_vm4  ;;  %v688_v50 = vsel %vm32_vm7, 1, %v1575_v1  ;;  %vm34_vm8 = vcmp.gt.f32.partialorder %v26_v49, 0.0 }
  0xfd   :  { %1465 = vtanh.f32 %v317_v53  ;;  %v922_v52 = vsel %vm34_vm8, 1, %v1575_v1  ;;  %v1156_v53 = vsel %vm36_vm9, 1, %v1575_v1 }
  0xfe   :  { %1467 = vtanh.f32 %v328_v59  ;;  %690 = vperm.xlu1 %1412, %v688_v50  }
 0x102   :  { %924 = vperm.xlu1 %1412, %v922_v52  }
 0x105   :  { %v1462_v60 = vpop.eup %1461 }
 0x106   :  { %v1464_v61 = vpop.eup %1463  ;;  %v321_v62 = vmul.f32 0.5, %v1462_v60  ;;  %1158 = vperm.xlu1 %1412, %v1156_v53  }
 0x107   :  { %v1466_v63 = vpop.eup %1465  ;;  %v325_v25 = vmul.f32 0.5, %v1464_v61  ;;  %v1304_v61 = vld [vmem:[%s2392_s0 + $0x30] sm:$0xff] }
 0x108   :  { %v322_v26 = vadd.f32 0.5, %v321_v62  ;;  %v1468_v38 = vpop.eup %1467 }
 0x109   :  { %v326_v30 = vadd.f32 0.5, %v325_v25  ;;  %v330_v40 = vmul.f32 0.5, %v1468_v38 }
 0x10a   :  { %v333_v31 = vmul.f32 %v1466_v63, %v322_v26 }
 0x10b   :  { %v332_v33 = vmul.f32 0.0, %v326_v30  ;;  %v331_v42 = vadd.f32 0.5, %v330_v40  ;;  %v1305_v40 = vld [vmem:[%s2392_s0 + $0x38] sm:$0xff] }
 0x10d   :  { %v1871_v37 = vadd.f32 %v333_v31, %v332_v33 }
 0x10f   :  { %1469 = vtanh.f32 %v1871_v37  ;;  %v343_v52 = vsel %vm341_vm4, %v1871_v37, 0.0 }
 0x119   :  { %v1470_v43 = vpop.eup %1469 }
 0x11a   :  { %v1876_v44 = vmul.f32 %v1470_v43, %v331_v42 }
 0x11c   :  { %v1297_v45 = vpack.c.bf16 %v1876_v44, %v1876_v44 }
 0x11e   :  { %1298 = vmatmul.mubr.msk.bf16.vlgmr.msra.gmra.mrb[4].mxu0 %vm1296_vm5, %v1297_v45  ;;  %1301 = vmatmul.mubr.msk.bf16.vlgmr.msra.gmra.mrb[4].mxu1 %vm1296_vm5, %v1297_v45 }
 0x11f   :  { %463 = vmatpush1.bf16.msra.mxu0 %v1619_v2  ;;  %504 = vmatpush1.bf16.msra.mxu1 %v1643_v6 }
 0x120   :  { %464 = vmatprep.subr.bf16.mxu0 %v1627_v3  ;;  %505 = vmatprep.subr.bf16.mxu1 %v1655_v8 }
 0x121   :  { %494 = vmatprep.mubr.bf16.mxu0 %v1575_v1  ;;  %535 = vmatprep.mubr.bf16.mxu1 %v1575_v1 }
 0x123   :  { %465 = vmatpush1.bf16.msra.mxu0 %v1638_v5  ;;  %506 = vmatpush1.bf16.msra.mxu1 %v1661_v9 }
 0x124   :  { %466 = vmatprep.subr.bf16.mxu0 %v1649_v7  ;;  %507 = vmatprep.subr.bf16.mxu1 %v1679_v12 }
 0x127   :  { %467 = vmatpush1.bf16.msra.mxu0 %v1668_v10  ;;  %508 = vmatpush1.bf16.msra.mxu1 %v1685_v13 }
 0x128   :  { %468 = vmatprep.subr.bf16.mxu0 %v1674_v11  ;;  %509 = vmatprep.subr.bf16.mxu1 %v1697_v15 }
 0x12b   :  { %469 = vmatpush1.bf16.msra.mxu0 %v1692_v14  ;;  %510 = vmatpush1.bf16.msra.mxu1 %v1714_v18 }
 0x12c   :  { %470 = vmatprep.subr.bf16.mxu0 %v1703_v16  ;;  %511 = vmatprep.subr.bf16.mxu1 %v1721_v19 }
 0x12f   :  { %471 = vmatpush1.bf16.msra.mxu0 %v1709_v17  ;;  %512 = vmatpush1.bf16.msra.mxu1 %v1733_v21 }
 0x130   :  { %472 = vmatprep.subr.bf16.mxu0 %v1727_v20  ;;  %513 = vmatprep.subr.bf16.mxu1 %v1745_v23 }
 0x133   :  { %473 = vmatpush1.bf16.msra.mxu0 %v1740_v22  ;;  %514 = vmatpush1.bf16.msra.mxu1 %v1763_v27 }
 0x134   :  { %474 = vmatprep.subr.bf16.mxu0 %v1751_v24  ;;  %515 = vmatprep.subr.bf16.mxu1 %v1775_v29 }
 0x137   :  { %475 = vmatpush1.bf16.msra.mxu0 %v1770_v28  ;;  %516 = vmatpush1.bf16.msra.mxu1 %v1792_v34 }
 0x138   :  { %476 = vmatprep.subr.bf16.mxu0 %v1785_v32  ;;  %517 = vmatprep.subr.bf16.mxu1 %v1804_v36 }
 0x13b   :  { %477 = vmatpush1.bf16.msra.mxu0 %v1799_v35  ;;  %518 = vmatpush1.bf16.msra.mxu1 %v1815_v39 }
 0x13c   :  { %579 = vmatprep.subr.bf16.mxu0 %v1612_v0  ;;  %620 = vmatprep.subr.bf16.mxu1 %v1633_v4 }
 0x1f1   :  { %v379_v56 = vpop.f32.mrb[4].mxu0  ;;  %v420_v57 = vpop.f32.mrb[4].mxu1 }
 0x1f2   :  { %v432_v58 = vadd.f32 %v1302_v54, %v379_v56  ;;  %v381_v59 = vpop.f32.mrb[5].mxu0  ;;  %v422_v60 = vpop.f32.mrb[5].mxu1  ;;  %v434_v38 = vadd.f32 %v1304_v61, %v420_v57 }
 0x1f3   :  { %v433_v62 = vadd.f32 %v1303_v55, %v381_v59  ;;  %v383_v63 = vpop.f32.mrb[6].mxu0  ;;  %v424_v25 = vpop.f32.mrb[6].mxu1  ;;  %v435_v42 = vadd.f32 %v1305_v40, %v422_v60  ;;  %v1308_v40 = vld [vmem:[%s2392_s0 + $0x50] sm:$0xff] }
 0x1f4   :  { %v436_v26 = vmul.f32 0.5, %v432_v58  ;;  %v384_v30 = vpop.f32.mrb[7].mxu0  ;;  %v425_v31 = vpop.f32.mrb[7].mxu1  ;;  %v342_v63 = vsel %vm341_vm4, %v1876_v44, 0.0  ;;  %v1307_v44 = vld [vmem:[%s2392_s0 + $0x48] sm:$0xff] }
 0x1f5   :  { %v440_v33 = vmul.f32 0.5, %v433_v62  ;;  %v445_v43 = vmul.f32 0.5, %v435_v42  ;;  %v457_v55 = vpop.permute.xlu0 %456 }
 0x1f6   :  { %1471 = vtanh.f32 %v436_v26  ;;  %vm458_vm10 = vcmp.eq.s32.totalorder %v457_v55, 1 }
 0x1f7   :  { %1473 = vtanh.f32 %v440_v33 }
 0x1f8   :  { %1475 = vtanh.f32 %v434_v38 }
 0x1f9   :  { %1477 = vtanh.f32 %v445_v43 }
 0x200   :  { %v1472_v45 = vpop.eup %1471 }
 0x201   :  { %v1474_v46 = vpop.eup %1473  ;;  %v438_v47 = vmul.f32 0.5, %v1472_v45 }
 0x202   :  { %v442_v48 = vmul.f32 0.5, %v1474_v46  ;;  %v1476_v50 = vpop.eup %1475 }
 0x203   :  { %v439_v49 = vadd.f32 0.5, %v438_v47  ;;  %v1478_v58 = vpop.eup %1477 }
 0x204   :  { %v443_v51 = vadd.f32 0.5, %v442_v48  ;;  %v447_v59 = vmul.f32 0.5, %v1478_v58 }
 0x205   :  { %v450_v53 = vmul.f32 %v1476_v50, %v439_v49 }
 0x206   :  { %v449_v54 = vmul.f32 %v443_v51, %v343_v52  ;;  %v448_v60 = vadd.f32 0.5, %v447_v59  ;;  %v1309_v51 = vld [vmem:[%s2392_s0 + $0x58] sm:$0xff] }
 0x208   :  { %v451_v56 = vadd.f32 %v450_v53, %v449_v54 }
 0x20a   :  { %1479 = vtanh.f32 %v451_v56  ;;  %v1949_v57 = vsel %vm458_vm10, %v451_v56, %v343_v52 }
 0x214   :  { %v1480_v61 = vpop.eup %1479 }
 0x215   :  { %v453_v62 = vmul.f32 %v1480_v61, %v448_v60 }
 0x217   :  { %v1954_v25 = vsel %vm458_vm10, %v453_v62, %v342_v63  ;;  %v574_v62 = vpop.permute.xlu1 %573 }
 0x218   :  { %v461_v37 = vpack.c.bf16 %v1954_v25, %v1954_v25  ;;  %vm575_vm11 = vcmp.eq.s32.totalorder %v574_v62, 1 }
 0x21a   :  { %495 = vmatmul.mubr.bf16.vlgmr.msra.gmra.mrb[8].mxu0 %v461_v37  ;;  %536 = vmatmul.mubr.bf16.vlgmr.msra.gmra.mrb[8].mxu1 %v461_v37 }
 0x21b   :  { %580 = vmatpush1.bf16.msra.mxu0 %v1619_v2  ;;  %621 = vmatpush1.bf16.msra.mxu1 %v1643_v6 }
 0x21c   :  { %581 = vmatprep.subr.bf16.mxu0 %v1627_v3  ;;  %622 = vmatprep.subr.bf16.mxu1 %v1655_v8 }
 0x21d   :  { %611 = vmatprep.mubr.bf16.mxu0 %v1575_v1  ;;  %652 = vmatprep.mubr.bf16.mxu1 %v1575_v1 }
 0x21f   :  { %582 = vmatpush1.bf16.msra.mxu0 %v1638_v5  ;;  %623 = vmatpush1.bf16.msra.mxu1 %v1661_v9 }
 0x220   :  { %583 = vmatprep.subr.bf16.mxu0 %v1649_v7  ;;  %624 = vmatprep.subr.bf16.mxu1 %v1679_v12 }
 0x223   :  { %584 = vmatpush1.bf16.msra.mxu0 %v1668_v10  ;;  %625 = vmatpush1.bf16.msra.mxu1 %v1685_v13 }
 0x224   :  { %585 = vmatprep.subr.bf16.mxu0 %v1674_v11  ;;  %626 = vmatprep.subr.bf16.mxu1 %v1697_v15 }
 0x227   :  { %586 = vmatpush1.bf16.msra.mxu0 %v1692_v14  ;;  %627 = vmatpush1.bf16.msra.mxu1 %v1714_v18 }
 0x228   :  { %587 = vmatprep.subr.bf16.mxu0 %v1703_v16  ;;  %628 = vmatprep.subr.bf16.mxu1 %v1721_v19 }
 0x22b   :  { %588 = vmatpush1.bf16.msra.mxu0 %v1709_v17  ;;  %629 = vmatpush1.bf16.msra.mxu1 %v1733_v21 }
 0x22c   :  { %589 = vmatprep.subr.bf16.mxu0 %v1727_v20  ;;  %630 = vmatprep.subr.bf16.mxu1 %v1745_v23 }
 0x22f   :  { %590 = vmatpush1.bf16.msra.mxu0 %v1740_v22  ;;  %631 = vmatpush1.bf16.msra.mxu1 %v1763_v27 }
 0x230   :  { %591 = vmatprep.subr.bf16.mxu0 %v1751_v24  ;;  %632 = vmatprep.subr.bf16.mxu1 %v1775_v29 }
 0x233   :  { %592 = vmatpush1.bf16.msra.mxu0 %v1770_v28  ;;  %633 = vmatpush1.bf16.msra.mxu1 %v1792_v34 }
 0x234   :  { %593 = vmatprep.subr.bf16.mxu0 %v1785_v32  ;;  %634 = vmatprep.subr.bf16.mxu1 %v1804_v36 }
 0x237   :  { %594 = vmatpush1.bf16.msra.mxu0 %v1799_v35  ;;  %635 = vmatpush1.bf16.msra.mxu1 %v1815_v39 }
 0x238   :  { %696 = vmatprep.subr.bf16.mxu0 %v1612_v0  ;;  %737 = vmatprep.subr.bf16.mxu1 %v1633_v4 }
 0x2ed   :  { %v496_v26 = vpop.f32.mrb[8].mxu0  ;;  %v537_v30 = vpop.f32.mrb[8].mxu1 }
 0x2ee   :  { %v549_v31 = vadd.f32 %v1306_v41, %v496_v26  ;;  %v498_v33 = vpop.f32.mrb[9].mxu0  ;;  %v539_v38 = vpop.f32.mrb[9].mxu1  ;;  %v551_v50 = vadd.f32 %v1308_v40, %v537_v30 }
 0x2ef   :  { %v550_v42 = vadd.f32 %v1307_v44, %v498_v33  ;;  %v500_v43 = vpop.f32.mrb[10].mxu0  ;;  %v541_v45 = vpop.f32.mrb[10].mxu1  ;;  %v552_v52 = vadd.f32 %v1309_v51, %v539_v38 }
 0x2f0   :  { %v553_v46 = vmul.f32 0.5, %v549_v31  ;;  %v501_v47 = vpop.f32.mrb[11].mxu0  ;;  %v542_v48 = vpop.f32.mrb[11].mxu1 }
 0x2f1   :  { %v557_v49 = vmul.f32 0.5, %v550_v42  ;;  %v562_v53 = vmul.f32 0.5, %v552_v52 }
 0x2f2   :  { %1481 = vtanh.f32 %v553_v46 }
 0x2f3   :  { %1483 = vtanh.f32 %v557_v49  ;;  %v1312_v49 = vld [vmem:[%s2392_s0 + $0x70] sm:$0xff] }
 0x2f4   :  { %1485 = vtanh.f32 %v551_v50 }
 0x2f5   :  { %1487 = vtanh.f32 %v562_v53 }
 0x2fc   :  { %v1482_v54 = vpop.eup %1481 }
 0x2fd   :  { %v1484_v55 = vpop.eup %1483  ;;  %v555_v56 = vmul.f32 0.5, %v1482_v54 }
 0x2fe   :  { %v559_v58 = vmul.f32 0.5, %v1484_v55  ;;  %v1486_v60 = vpop.eup %1485 }
 0x2ff   :  { %v556_v59 = vadd.f32 0.5, %v555_v56  ;;  %v1488_v26 = vpop.eup %1487 }
 0x300   :  { %v560_v61 = vadd.f32 0.5, %v559_v58  ;;  %v564_v30 = vmul.f32 0.5, %v1488_v26 }
 0x301   :  { %v567_v63 = vmul.f32 %v1486_v60, %v556_v59  ;;  %v1313_v59 = vld [vmem:[%s2392_s0 + $0x78] sm:$0xff] }
 0x302   :  { %v566_v37 = vmul.f32 %v560_v61, %v1949_v57  ;;  %v565_v31 = vadd.f32 0.5, %v564_v30 }
 0x304   :  { %v568_v41 = vadd.f32 %v567_v63, %v566_v37 }
 0x306   :  { %1489 = vtanh.f32 %v568_v41  ;;  %v2006_v44 = vsel %vm575_vm11, %v568_v41, %v1949_v57  ;;  %v1310_v57 = vld [vmem:[%s2392_s0 + $0x60] sm:$0xff] }
 0x310   :  { %v1490_v33 = vpop.eup %1489 }
 0x311   :  { %v570_v38 = vmul.f32 %v1490_v33, %v565_v31 }
 0x313   :  { %v2009_v40 = vsel %vm575_vm11, %v570_v38, %v1954_v25  ;;  %v1311_v25 = vld [vmem:[%s2392_s0 + $0x68] sm:$0xff] }
 0x314   :  { %v578_v42 = vpack.c.bf16 %v2009_v40, %v2009_v40 }
 0x316   :  { %612 = vmatmul.mubr.bf16.vlgmr.msra.gmra.mrb[12].mxu0 %v578_v42  ;;  %653 = vmatmul.mubr.bf16.vlgmr.msra.gmra.mrb[12].mxu1 %v578_v42  ;;  %v691_v42 = vpop.permute.xlu1 %690 }
 0x317   :  { %697 = vmatpush1.bf16.msra.mxu0 %v1619_v2  ;;  %738 = vmatpush1.bf16.msra.mxu1 %v1643_v6  ;;  %vm692_vm12 = vcmp.eq.s32.totalorder %v691_v42, 1 }
 0x318   :  { %698 = vmatprep.subr.bf16.mxu0 %v1627_v3  ;;  %739 = vmatprep.subr.bf16.mxu1 %v1655_v8 }
 0x319   :  { %728 = vmatprep.mubr.bf16.mxu0 %v1575_v1  ;;  %769 = vmatprep.mubr.bf16.mxu1 %v1575_v1 }
 0x31b   :  { %699 = vmatpush1.bf16.msra.mxu0 %v1638_v5  ;;  %740 = vmatpush1.bf16.msra.mxu1 %v1661_v9 }
 0x31c   :  { %700 = vmatprep.subr.bf16.mxu0 %v1649_v7  ;;  %741 = vmatprep.subr.bf16.mxu1 %v1679_v12 }
 0x31f   :  { %701 = vmatpush1.bf16.msra.mxu0 %v1668_v10  ;;  %742 = vmatpush1.bf16.msra.mxu1 %v1685_v13 }
 0x320   :  { %702 = vmatprep.subr.bf16.mxu0 %v1674_v11  ;;  %743 = vmatprep.subr.bf16.mxu1 %v1697_v15 }
 0x323   :  { %703 = vmatpush1.bf16.msra.mxu0 %v1692_v14  ;;  %744 = vmatpush1.bf16.msra.mxu1 %v1714_v18 }
 0x324   :  { %704 = vmatprep.subr.bf16.mxu0 %v1703_v16  ;;  %745 = vmatprep.subr.bf16.mxu1 %v1721_v19 }
 0x327   :  { %705 = vmatpush1.bf16.msra.mxu0 %v1709_v17  ;;  %746 = vmatpush1.bf16.msra.mxu1 %v1733_v21 }
 0x328   :  { %706 = vmatprep.subr.bf16.mxu0 %v1727_v20  ;;  %747 = vmatprep.subr.bf16.mxu1 %v1745_v23 }
 0x32b   :  { %707 = vmatpush1.bf16.msra.mxu0 %v1740_v22  ;;  %748 = vmatpush1.bf16.msra.mxu1 %v1763_v27 }
 0x32c   :  { %708 = vmatprep.subr.bf16.mxu0 %v1751_v24  ;;  %749 = vmatprep.subr.bf16.mxu1 %v1775_v29 }
 0x32f   :  { %709 = vmatpush1.bf16.msra.mxu0 %v1770_v28  ;;  %750 = vmatpush1.bf16.msra.mxu1 %v1792_v34 }
 0x330   :  { %710 = vmatprep.subr.bf16.mxu0 %v1785_v32  ;;  %751 = vmatprep.subr.bf16.mxu1 %v1804_v36 }
 0x333   :  { %711 = vmatpush1.bf16.msra.mxu0 %v1799_v35  ;;  %752 = vmatpush1.bf16.msra.mxu1 %v1815_v39 }
 0x334   :  { %813 = vmatprep.subr.bf16.mxu0 %v1612_v0  ;;  %854 = vmatprep.subr.bf16.mxu1 %v1633_v4 }
 0x3e9   :  { %v613_v43 = vpop.f32.mrb[12].mxu0  ;;  %v654_v45 = vpop.f32.mrb[12].mxu1 }
 0x3ea   :  { %v666_v46 = vadd.f32 %v1310_v57, %v613_v43  ;;  %v615_v47 = vpop.f32.mrb[13].mxu0  ;;  %v656_v48 = vpop.f32.mrb[13].mxu1  ;;  %v668_v58 = vadd.f32 %v1312_v49, %v654_v45 }
 0x3eb   :  { %v667_v50 = vadd.f32 %v1311_v25, %v615_v47  ;;  %v617_v51 = vpop.f32.mrb[14].mxu0  ;;  %v658_v52 = vpop.f32.mrb[14].mxu1  ;;  %v669_v60 = vadd.f32 %v1313_v59, %v656_v48 }
 0x3ec   :  { %v670_v53 = vmul.f32 0.5, %v666_v46  ;;  %v618_v54 = vpop.f32.mrb[15].mxu0  ;;  %v659_v55 = vpop.f32.mrb[15].mxu1 }
 0x3ed   :  { %v674_v56 = vmul.f32 0.5, %v667_v50  ;;  %v679_v61 = vmul.f32 0.5, %v669_v60  ;;  %v1317_v54 = vld [vmem:[%s2392_s0 + $0x98] sm:$0xff] }
 0x3ee   :  { %1491 = vtanh.f32 %v670_v53 }
 0x3ef   :  { %1493 = vtanh.f32 %v674_v56 }
 0x3f0   :  { %1495 = vtanh.f32 %v668_v58 }
 0x3f1   :  { %1497 = vtanh.f32 %v679_v61 }
 0x3f8   :  { %v1492_v62 = vpop.eup %1491 }
 0x3f9   :  { %v1494_v63 = vpop.eup %1493  ;;  %v672_v37 = vmul.f32 0.5, %v1492_v62 }
 0x3fa   :  { %v676_v41 = vmul.f32 0.5, %v1494_v63  ;;  %v1496_v30 = vpop.eup %1495 }
 0x3fb   :  { %v673_v26 = vadd.f32 0.5, %v672_v37  ;;  %v1498_v43 = vpop.eup %1497 }
 0x3fc   :  { %v677_v31 = vadd.f32 0.5, %v676_v41  ;;  %v681_v45 = vmul.f32 0.5, %v1498_v43 }
 0x3fd   :  { %v684_v33 = vmul.f32 %v1496_v30, %v673_v26  ;;  %v808_v30 = vpop.permute.xlu0 %807 }
 0x3fe   :  { %v683_v38 = vmul.f32 %v677_v31, %v2006_v44  ;;  %v682_v46 = vadd.f32 0.5, %v681_v45  ;;  %vm809_vm13 = vcmp.eq.s32.totalorder %v808_v30, 1  ;;  %v1559_v30 = vld [vmem:[%s2390_s2 + $0x84] ss:$16 sps:$4 sm:$0xff]  }
 0x400   :  { %v685_v57 = vadd.f32 %v684_v33, %v683_v38 }
 0x402   :  { %1499 = vtanh.f32 %v685_v57  ;;  %v2061_v25 = vsel %vm692_vm12, %v685_v57, %v2006_v44 }
 0x40c   :  { %v1500_v47 = vpop.eup %1499 }
 0x40d   :  { %v687_v48 = vmul.f32 %v1500_v47, %v682_v46 }
 0x40f   :  { %v2064_v49 = vsel %vm692_vm12, %v687_v48, %v2009_v40  ;;  %v2126_v48 = vld [vmem:[%s2390_s2] ss:$16 sps:$4 sm:$0xff]  }
 0x410   :  { %v695_v50 = vpack.c.bf16 %v2064_v49, %v2064_v49 }
 0x412   :  { %729 = vmatmul.mubr.bf16.vlgmr.msra.gmra.mrb[16].mxu0 %v695_v50  ;;  %770 = vmatmul.mubr.bf16.vlgmr.msra.gmra.mrb[16].mxu1 %v695_v50  ;;  %v2144_v50 = vld [vmem:[%s2390_s2 + $0x2c] ss:$16 sps:$4 sm:$0xff]  }
 0x413   :  { %814 = vmatpush1.bf16.msra.mxu0 %v1619_v2  ;;  %855 = vmatpush1.bf16.msra.mxu1 %v1643_v6  ;;  %v1314_v2 = vld [vmem:[%s2392_s0 + $0x80] sm:$0xff] }
 0x414   :  { %815 = vmatprep.subr.bf16.mxu0 %v1627_v3  ;;  %856 = vmatprep.subr.bf16.mxu1 %v1655_v8  ;;  %v1315_v3 = vld [vmem:[%s2392_s0 + $0x88] sm:$0xff] }
 0x415   :  { %845 = vmatprep.mubr.bf16.mxu0 %v1575_v1  ;;  %886 = vmatprep.mubr.bf16.mxu1 %v1575_v1 }
 0x417   :  { %816 = vmatpush1.bf16.msra.mxu0 %v1638_v5  ;;  %857 = vmatpush1.bf16.msra.mxu1 %v1661_v9 }
 0x418   :  { %817 = vmatprep.subr.bf16.mxu0 %v1649_v7  ;;  %858 = vmatprep.subr.bf16.mxu1 %v1679_v12 }
 0x41b   :  { %818 = vmatpush1.bf16.msra.mxu0 %v1668_v10  ;;  %859 = vmatpush1.bf16.msra.mxu1 %v1685_v13  ;;  %v1316_v10 = vld [vmem:[%s2392_s0 + $0x90] sm:$0xff] }
 0x41c   :  { %819 = vmatprep.subr.bf16.mxu0 %v1674_v11  ;;  %860 = vmatprep.subr.bf16.mxu1 %v1697_v15 }
 0x41f   :  { %820 = vmatpush1.bf16.msra.mxu0 %v1692_v14  ;;  %861 = vmatpush1.bf16.msra.mxu1 %v1714_v18 }
 0x420   :  { %821 = vmatprep.subr.bf16.mxu0 %v1703_v16  ;;  %862 = vmatprep.subr.bf16.mxu1 %v1721_v19 }
 0x423   :  { %822 = vmatpush1.bf16.msra.mxu0 %v1709_v17  ;;  %863 = vmatpush1.bf16.msra.mxu1 %v1733_v21 }
 0x424   :  { %823 = vmatprep.subr.bf16.mxu0 %v1727_v20  ;;  %864 = vmatprep.subr.bf16.mxu1 %v1745_v23 }
 0x427   :  { %824 = vmatpush1.bf16.msra.mxu0 %v1740_v22  ;;  %865 = vmatpush1.bf16.msra.mxu1 %v1763_v27 }
 0x428   :  { %825 = vmatprep.subr.bf16.mxu0 %v1751_v24  ;;  %866 = vmatprep.subr.bf16.mxu1 %v1775_v29 }
 0x42b   :  { %826 = vmatpush1.bf16.msra.mxu0 %v1770_v28  ;;  %867 = vmatpush1.bf16.msra.mxu1 %v1792_v34 }
 0x42c   :  { %827 = vmatprep.subr.bf16.mxu0 %v1785_v32  ;;  %868 = vmatprep.subr.bf16.mxu1 %v1804_v36 }
 0x42f   :  { %828 = vmatpush1.bf16.msra.mxu0 %v1799_v35  ;;  %869 = vmatpush1.bf16.msra.mxu1 %v1815_v39 }
 0x430   :  { %930 = vmatprep.subr.bf16.mxu0 %v1612_v0  ;;  %971 = vmatprep.subr.bf16.mxu1 %v1633_v4 }
 0x4e5   :  { %v730_v5 = vpop.f32.mrb[16].mxu0  ;;  %v771_v6 = vpop.f32.mrb[16].mxu1 }
 0x4e6   :  { %v783_v7 = vadd.f32 %v1314_v2, %v730_v5  ;;  %v732_v8 = vpop.f32.mrb[17].mxu0  ;;  %v773_v9 = vpop.f32.mrb[17].mxu1  ;;  %v785_v53 = vadd.f32 %v1316_v10, %v771_v6  ;;  %v2152_v2 = vld [vmem:[%s2390_s2 + $0x20] ss:$16 sps:$4 sm:$0xff]   ;;  %v2164_v5 = vld [vmem:[%s2390_s2 + $0x44] ss:$16 sps:$4 sm:$0xff]  }
 0x4e7   :  { %v784_v0 = vadd.f32 %v1315_v3, %v732_v8  ;;  %v734_v11 = vpop.f32.mrb[18].mxu0  ;;  %v775_v4 = vpop.f32.mrb[18].mxu1  ;;  %v786_v55 = vadd.f32 %v1317_v54, %v773_v9  ;;  %v2158_v3 = vld [vmem:[%s2390_s2 + $0x28] ss:$16 sps:$4 sm:$0xff]   ;;  %v2171_v6 = vld [vmem:[%s2390_s2 + $0x40] ss:$16 sps:$4 sm:$0xff]  }
 0x4e8   :  { %v787_v44 = vmul.f32 0.5, %v783_v7  ;;  %v735_v40 = vpop.f32.mrb[19].mxu0  ;;  %v776_v51 = vpop.f32.mrb[19].mxu1  ;;  %v2178_v7 = vld [vmem:[%s2390_s2 + $0x64] ss:$16 sps:$4 sm:$0xff]  }
 0x4e9   :  { %v791_v52 = vmul.f32 0.5, %v784_v0  ;;  %v796_v56 = vmul.f32 0.5, %v786_v55 }
 0x4ea   :  { %1501 = vtanh.f32 %v787_v44 }
 0x4eb   :  { %1503 = vtanh.f32 %v791_v52  ;;  %v925_v52 = vpop.permute.xlu1 %924 }
 0x4ec   :  { %1505 = vtanh.f32 %v785_v53  ;;  %vm926_vm14 = vcmp.eq.s32.totalorder %v925_v52, 1 }
 0x4ed   :  { %1507 = vtanh.f32 %v796_v56 }
 0x4f4   :  { %v1502_v58 = vpop.eup %1501 }
 0x4f5   :  { %v1504_v59 = vpop.eup %1503  ;;  %v789_v60 = vmul.f32 0.5, %v1502_v58 }
 0x4f6   :  { %v793_v61 = vmul.f32 0.5, %v1504_v59  ;;  %v1506_v63 = vpop.eup %1505 }
 0x4f7   :  { %v790_v62 = vadd.f32 0.5, %v789_v60  ;;  %v1508_v38 = vpop.eup %1507 }
 0x4f8   :  { %v794_v37 = vadd.f32 0.5, %v793_v61  ;;  %v798_v42 = vmul.f32 0.5, %v1508_v38  ;;  %v1562_v38 = vld [vmem:[%s2390_s2 + $0x88] ss:$16 sps:$4 sm:$0xff]  }
 0x4f9   :  { %v801_v41 = vmul.f32 %v1506_v63, %v790_v62  ;;  %v1554_v63 = vld [vmem:[%s2390_s2 + $0x4c] ss:$16 sps:$4 sm:$0xff]  }
 0x4fa   :  { %v800_v26 = vmul.f32 %v794_v37, %v2061_v25  ;;  %v799_v57 = vadd.f32 0.5, %v798_v42  ;;  %v1555_v37 = vld [vmem:[%s2390_s2 + $0x48] ss:$16 sps:$4 sm:$0xff]   ;;  %v1563_v42 = vld [vmem:[%s2390_s2 + $0xa4] ss:$16 sps:$4 sm:$0xff]  }
 0x4fc   :  { %v802_v31 = vadd.f32 %v801_v41, %v800_v26  ;;  %v1557_v41 = vld [vmem:[%s2390_s2 + $0x60] ss:$16 sps:$4 sm:$0xff]   ;;  %v1558_v26 = vld [vmem:[%s2390_s2 + $0x68] ss:$16 sps:$4 sm:$0xff]  }
 0x4fe   :  { %1509 = vtanh.f32 %v802_v31  ;;  %v2116_v33 = vsel %vm809_vm13, %v802_v31, %v2061_v25  ;;  %v2132_v25 = vld [vmem:[%s2390_s2 + $0x8] ss:$16 sps:$4 sm:$0xff]   ;;  %v1560_v31 = vld [vmem:[%s2390_s2 + $0x8c] ss:$16 sps:$4 sm:$0xff]  }
 0x508   :  { %v1510_v43 = vpop.eup %1509 }
 0x509   :  { %v804_v45 = vmul.f32 %v1510_v43, %v799_v57  ;;  %v1564_v57 = vld [vmem:[%s2390_s2 + $0xac] ss:$16 sps:$4 sm:$0xff]   ;;  %v1565_v43 = vld [vmem:[%s2390_s2 + $0xa0] ss:$16 sps:$4 sm:$0xff]  }
 0x50b   :  { %v2119_v46 = vsel %vm809_vm13, %v804_v45, %v2064_v49  ;;  %v2138_v49 = vld [vmem:[%s2390_s2 + $0x24] ss:$16 sps:$4 sm:$0xff]   ;;  %v1566_v45 = vld [vmem:[%s2390_s2 + $0xa8] ss:$16 sps:$4 sm:$0xff]  }
 0x50c   :  { %v812_v47 = vpack.c.bf16 %v2119_v46, %v2119_v46 }
 0x50e   :  { %846 = vmatmul.mubr.bf16.vlgmr.msra.gmra.mrb[20].mxu0 %v812_v47  ;;  %887 = vmatmul.mubr.bf16.vlgmr.msra.gmra.mrb[20].mxu1 %v812_v47  ;;  %v1568_v47 = vld [vmem:[%s2390_s2 + $0xcc] ss:$16 sps:$4 sm:$0xff]  }
 0x50f   :  { %931 = vmatpush1.bf16.msra.mxu0 %v2126_v48  ;;  %972 = vmatpush1.bf16.msra.mxu1 %v2132_v25 }
 0x510   :  { %932 = vmatprep.subr.bf16.mxu0 %v2138_v49  ;;  %973 = vmatprep.subr.bf16.mxu1 %v2144_v50 }
 0x511   :  { %962 = vmatprep.mubr.bf16.mxu0 %v1575_v1  ;;  %1003 = vmatprep.mubr.bf16.mxu1 %v1575_v1 }
 0x513   :  { %933 = vmatpush1.bf16.msra.mxu0 %v2152_v2  ;;  %974 = vmatpush1.bf16.msra.mxu1 %v2158_v3 }
 0x514   :  { %934 = vmatprep.subr.bf16.mxu0 %v2164_v5  ;;  %975 = vmatprep.subr.bf16.mxu1 %v1679_v12  ;;  %v1552_v12 = vld [vmem:[%s2390_s2 + $0x4] ss:$16 sps:$4 sm:$0xff]  }
 0x517   :  { %935 = vmatpush1.bf16.msra.mxu0 %v2171_v6  ;;  %976 = vmatpush1.bf16.msra.mxu1 %v1685_v13  ;;  %v1553_v13 = vld [vmem:[%s2390_s2 + $0xc] ss:$16 sps:$4 sm:$0xff]  }
 0x518   :  { %936 = vmatprep.subr.bf16.mxu0 %v2178_v7  ;;  %977 = vmatprep.subr.bf16.mxu1 %v1697_v15  ;;  %v1319_v15 = vld [vmem:[%s2392_s0 + $0xa8] sm:$0xff] }
 0x51b   :  { %937 = vmatpush1.bf16.msra.mxu0 %v1692_v14  ;;  %978 = vmatpush1.bf16.msra.mxu1 %v1714_v18  ;;  %v1318_v14 = vld [vmem:[%s2392_s0 + $0xa0] sm:$0xff] }
 0x51c   :  { %938 = vmatprep.subr.bf16.mxu0 %v1703_v16  ;;  %979 = vmatprep.subr.bf16.mxu1 %v1721_v19 }
 0x51f   :  { %939 = vmatpush1.bf16.msra.mxu0 %v1709_v17  ;;  %980 = vmatpush1.bf16.msra.mxu1 %v1733_v21  ;;  %v1320_v21 = vld [vmem:[%s2392_s0 + $0xb0] sm:$0xff] }
 0x520   :  { %940 = vmatprep.subr.bf16.mxu0 %v1727_v20  ;;  %981 = vmatprep.subr.bf16.mxu1 %v1745_v23 }
 0x523   :  { %941 = vmatpush1.bf16.msra.mxu0 %v1740_v22  ;;  %982 = vmatpush1.bf16.msra.mxu1 %v1763_v27 }
 0x524   :  { %942 = vmatprep.subr.bf16.mxu0 %v1751_v24  ;;  %983 = vmatprep.subr.bf16.mxu1 %v1775_v29 }
 0x527   :  { %943 = vmatpush1.bf16.msra.mxu0 %v1770_v28  ;;  %984 = vmatpush1.bf16.msra.mxu1 %v1792_v34 }
 0x528   :  { %944 = vmatprep.subr.bf16.mxu0 %v1785_v32  ;;  %985 = vmatprep.subr.bf16.mxu1 %v1804_v36 }
 0x52b   :  { %945 = vmatpush1.bf16.msra.mxu0 %v1799_v35  ;;  %986 = vmatpush1.bf16.msra.mxu1 %v1815_v39  ;;  %v1321_v35 = vld [vmem:[%s2392_s0 + $0xb8] sm:$0xff] }
 0x52c   :  { %1047 = vmatprep.subr.bf16.mxu0 %v1552_v12  ;;  %1088 = vmatprep.subr.bf16.mxu1 %v1553_v13 }
 0x5e1   :  { %v847_v16 = vpop.f32.mrb[20].mxu0  ;;  %v888_v17 = vpop.f32.mrb[20].mxu1 }
 0x5e2   :  { %v900_v18 = vadd.f32 %v1318_v14, %v847_v16  ;;  %v849_v19 = vpop.f32.mrb[21].mxu0  ;;  %v890_v20 = vpop.f32.mrb[21].mxu1  ;;  %v902_v34 = vadd.f32 %v1320_v21, %v888_v17  ;;  %v1324_v16 = vld [vmem:[%s2392_s0 + $0xd0] sm:$0xff] }
 0x5e3   :  { %v901_v22 = vadd.f32 %v1319_v15, %v849_v19  ;;  %v851_v23 = vpop.f32.mrb[22].mxu0  ;;  %v892_v24 = vpop.f32.mrb[22].mxu1  ;;  %v903_v36 = vadd.f32 %v1321_v35, %v890_v20 }
 0x5e4   :  { %v904_v27 = vmul.f32 0.5, %v900_v18  ;;  %v852_v28 = vpop.f32.mrb[23].mxu0  ;;  %v893_v29 = vpop.f32.mrb[23].mxu1 }
 0x5e5   :  { %v908_v32 = vmul.f32 0.5, %v901_v22  ;;  %v913_v39 = vmul.f32 0.5, %v903_v36 }
 0x5e6   :  { %1511 = vtanh.f32 %v904_v27  ;;  %v1325_v27 = vld [vmem:[%s2392_s0 + $0xd8] sm:$0xff] }
 0x5e7   :  { %1513 = vtanh.f32 %v908_v32 }
 0x5e8   :  { %1515 = vtanh.f32 %v902_v34 }
 0x5e9   :  { %1517 = vtanh.f32 %v913_v39 }
 0x5f0   :  { %v1512_v8 = vpop.eup %1511 }
 0x5f1   :  { %v1514_v9 = vpop.eup %1513  ;;  %v906_v10 = vmul.f32 0.5, %v1512_v8 }
 0x5f2   :  { %v910_v0 = vmul.f32 0.5, %v1514_v9  ;;  %v1516_v4 = vpop.eup %1515 }
 0x5f3   :  { %v907_v11 = vadd.f32 0.5, %v906_v10  ;;  %v1518_v55 = vpop.eup %1517 }
 0x5f4   :  { %v911_v44 = vadd.f32 0.5, %v910_v0  ;;  %v915_v56 = vmul.f32 0.5, %v1518_v55  ;;  %v1042_v0 = vpop.permute.xlu0 %1041 }
 0x5f5   :  { %v918_v40 = vmul.f32 %v1516_v4, %v907_v11  ;;  %vm1043_vm15 = vcmp.eq.s32.totalorder %v1042_v0, 1 }
 0x5f6   :  { %v917_v51 = vmul.f32 %v911_v44, %v2116_v33  ;;  %v916_v58 = vadd.f32 0.5, %v915_v56 }
 0x5f8   :  { %v919_v53 = vadd.f32 %v918_v40, %v917_v51 }
 0x5fa   :  { %1519 = vtanh.f32 %v919_v53  ;;  %v2220_v54 = vsel %vm926_vm14, %v919_v53, %v2116_v33  ;;  %v1561_v33 = vld [vmem:[%s2390_s2 + $0x80] ss:$16 sps:$4 sm:$0xff]  }
 0x604   :  { %v1520_v59 = vpop.eup %1519 }
 0x605   :  { %v921_v60 = vmul.f32 %v1520_v59, %v916_v58  ;;  %v1162_v59 = vld [vmem:[%s2393_s3] sm:$0xff] }
 0x607   :  { %v2223_v61 = vsel %vm926_vm14, %v921_v60, %v2119_v46  ;;  %v1567_v46 = vld [vmem:[%s2390_s2 + $0xc4] ss:$16 sps:$4 sm:$0xff]  }
 0x608   :  { %v929_v62 = vpack.c.bf16 %v2223_v61, %v2223_v61 }
 0x60a   :  { %963 = vmatmul.mubr.bf16.vlgmr.msra.gmra.mrb[24].mxu0 %v929_v62  ;;  %1004 = vmatmul.mubr.bf16.vlgmr.msra.gmra.mrb[24].mxu1 %v929_v62  ;;  %v1576_v62 = vmov 0.0|0.0  }
 0x60b   :  { %1048 = vmatpush1.bf16.msra.mxu0 %v2126_v48  ;;  %1089 = vmatpush1.bf16.msra.mxu1 %v2132_v25  ;;  %v1569_v48 = vld [vmem:[%s2390_s2 + $0xc0] ss:$16 sps:$4 sm:$0xff]   ;;  %v1570_v25 = vld [vmem:[%s2390_s2 + $0xc8] ss:$16 sps:$4 sm:$0xff]  }
 0x60c   :  { %1049 = vmatprep.subr.bf16.mxu0 %v2138_v49  ;;  %1090 = vmatprep.subr.bf16.mxu1 %v2144_v50  ;;  %v1571_v49 = vld [vmem:[%s2390_s2 + $0xe4] ss:$16 sps:$4 sm:$0xff]   ;;  %v1572_v50 = vld [vmem:[%s2390_s2 + $0xec] ss:$16 sps:$4 sm:$0xff]  }
 0x60d   :  { %1079 = vmatprep.mubr.bf16.mxu0 %v1575_v1  ;;  %1120 = vmatprep.mubr.bf16.mxu1 %v1575_v1  ;;  %v1556_v1 = vld [vmem:[%s2390_s2 + $0x6c] ss:$16 sps:$4 sm:$0xff]  }
 0x60f   :  { %1050 = vmatpush1.bf16.msra.mxu0 %v2152_v2  ;;  %1091 = vmatpush1.bf16.msra.mxu1 %v2158_v3  ;;  %v1573_v2 = vld [vmem:[%s2390_s2 + $0xe0] ss:$16 sps:$4 sm:$0xff]   ;;  %v1574_v3 = vld [vmem:[%s2390_s2 + $0xe8] ss:$16 sps:$4 sm:$0xff]  }
 0x610   :  { %1051 = vmatprep.subr.bf16.mxu0 %v2164_v5  ;;  %1092 = vmatprep.subr.bf16.mxu1 %v1554_v63  ;;  %v1322_v5 = vld [vmem:[%s2392_s0 + $0xc0] sm:$0xff]  ;;  %v1165_v63 = vld [vmem:[%s2393_s3 + $0x18] sm:$0xff] }
 0x613   :  { %1052 = vmatpush1.bf16.msra.mxu0 %v2171_v6  ;;  %1093 = vmatpush1.bf16.msra.mxu1 %v1555_v37  ;;  %v1323_v6 = vld [vmem:[%s2392_s0 + $0xc8] sm:$0xff] }
 0x614   :  { %1053 = vmatprep.subr.bf16.mxu0 %v2178_v7  ;;  %1094 = vmatprep.subr.bf16.mxu1 %v1556_v1  ;;  %v1166_v1 = vld [vmem:[%s2393_s3 + $0x20] sm:$0xff] }
 0x617   :  { %1054 = vmatpush1.bf16.msra.mxu0 %v1557_v41  ;;  %1095 = vmatpush1.bf16.msra.mxu1 %v1558_v26  ;;  %v1167_v41 = vld [vmem:[%s2393_s3 + $0x28] sm:$0xff] }
 0x618   :  { %1055 = vmatprep.subr.bf16.mxu0 %v1559_v30  ;;  %1096 = vmatprep.subr.bf16.mxu1 %v1560_v31  ;;  %v1390_v26 = vpack.c.bf16 %v1167_v41, %v1166_v1  ;;  %v1168_v30 = vld [vmem:[%s2393_s3 + $0x30] sm:$0xff]  ;;  %v1169_v31 = vld [vmem:[%s2393_s3 + $0x38] sm:$0xff] }
 0x61b   :  { %1056 = vmatpush1.bf16.msra.mxu0 %v1561_v33  ;;  %1097 = vmatpush1.bf16.msra.mxu1 %v1562_v38  ;;  %v1393_v33 = vpack.c.bf16 %v1169_v31, %v1168_v30  ;;  %v1170_v38 = vld [vmem:[%s2393_s3 + $0x40] sm:$0xff] }
 0x61c   :  { %1057 = vmatprep.subr.bf16.mxu0 %v1563_v42  ;;  %1098 = vmatprep.subr.bf16.mxu1 %v1564_v57  ;;  %v1171_v42 = vld [vmem:[%s2393_s3 + $0x48] sm:$0xff] }
 0x61d   :  { %v1396_v57 = vpack.c.bf16 %v1171_v42, %v1170_v38 }
 0x61f   :  { %1058 = vmatpush1.bf16.msra.mxu0 %v1565_v43  ;;  %1099 = vmatpush1.bf16.msra.mxu1 %v1566_v45  ;;  %v1172_v43 = vld [vmem:[%s2393_s3 + $0x50] sm:$0xff]  ;;  %v1173_v45 = vld [vmem:[%s2393_s3 + $0x58] sm:$0xff] }
 0x620   :  { %1059 = vmatprep.subr.bf16.mxu0 %v1567_v46  ;;  %1100 = vmatprep.subr.bf16.mxu1 %v1568_v47  ;;  %v1399_v46 = vpack.c.bf16 %v1173_v45, %v1172_v43  ;;  %v1174_v47 = vld [vmem:[%s2393_s3 + $0x60] sm:$0xff] }
 0x623   :  { %1060 = vmatpush1.bf16.msra.mxu0 %v1569_v48  ;;  %1101 = vmatpush1.bf16.msra.mxu1 %v1570_v25  ;;  %v1175_v48 = vld [vmem:[%s2393_s3 + $0x68] sm:$0xff] }
 0x624   :  { %1061 = vmatprep.subr.bf16.mxu0 %v1571_v49  ;;  %1102 = vmatprep.subr.bf16.mxu1 %v1572_v50  ;;  %v1402_v25 = vpack.c.bf16 %v1175_v48, %v1174_v47  ;;  %v1176_v49 = vld [vmem:[%s2393_s3 + $0x70] sm:$0xff]  ;;  %v1177_v50 = vld [vmem:[%s2393_s3 + $0x78] sm:$0xff] }
 0x627   :  { %1062 = vmatpush1.bf16.msra.mxu0 %v1573_v2  ;;  %1103 = vmatpush1.bf16.msra.mxu1 %v1574_v3  ;;  %v1405_v2 = vpack.c.bf16 %v1177_v50, %v1176_v49  ;;  %v1578_v3 = vmov 0.0  }
 0x628   :  { %1383 = vmatprep.subr.bf16.mxu0 %v1576_v62 }
 0x6dd   :  { %v964_v7 = vpop.f32.mrb[24].mxu0  ;;  %v1005_v12 = vpop.f32.mrb[24].mxu1 }
 0x6de   :  { %v1017_v13 = vadd.f32 %v1322_v5, %v964_v7  ;;  %v966_v14 = vpop.f32.mrb[25].mxu0  ;;  %v1007_v15 = vpop.f32.mrb[25].mxu1  ;;  %v1019_v24 = vadd.f32 %v1324_v16, %v1005_v12  ;;  %v1326_v5 = vld [vmem:[%s2392_s0 + $0xe0] sm:$0xff]  ;;  %v1328_v16 = vld [vmem:[%s2392_s0 + $0xf0] sm:$0xff] }
 0x6df   :  { %v1018_v17 = vadd.f32 %v1323_v6, %v966_v14  ;;  %v968_v18 = vpop.f32.mrb[26].mxu0  ;;  %v1009_v19 = vpop.f32.mrb[26].mxu1  ;;  %v1020_v28 = vadd.f32 %v1325_v27, %v1007_v15  ;;  %v1327_v6 = vld [vmem:[%s2392_s0 + $0xe8] sm:$0xff]  ;;  %v1329_v27 = vld [vmem:[%s2392_s0 + $0xf8] sm:$0xff] }
 0x6e0   :  { %v1021_v20 = vmul.f32 0.5, %v1017_v13  ;;  %v969_v21 = vpop.f32.mrb[27].mxu0  ;;  %v1010_v22 = vpop.f32.mrb[27].mxu1 }
 0x6e1   :  { %v1025_v23 = vmul.f32 0.5, %v1018_v17  ;;  %v1030_v29 = vmul.f32 0.5, %v1020_v28 }
 0x6e2   :  { %1521 = vtanh.f32 %v1021_v20 }
 0x6e3   :  { %1523 = vtanh.f32 %v1025_v23 }
 0x6e4   :  { %1525 = vtanh.f32 %v1019_v24 }
 0x6e5   :  { %1527 = vtanh.f32 %v1030_v29 }
 0x6ec   :  { %v1522_v32 = vpop.eup %1521 }
 0x6ed   :  { %v1524_v34 = vpop.eup %1523  ;;  %v1023_v35 = vmul.f32 0.5, %v1522_v32 }
 0x6ee   :  { %v1027_v36 = vmul.f32 0.5, %v1524_v34  ;;  %v1526_v8 = vpop.eup %1525 }
 0x6ef   :  { %v1024_v39 = vadd.f32 0.5, %v1023_v35  ;;  %v1528_v40 = vpop.eup %1527 }
 0x6f0   :  { %v1028_v9 = vadd.f32 0.5, %v1027_v36  ;;  %v1032_v51 = vmul.f32 0.5, %v1528_v40 }
 0x6f1   :  { %v1035_v10 = vmul.f32 %v1526_v8, %v1024_v39 }
 0x6f2   :  { %v1034_v11 = vmul.f32 %v1028_v9, %v2220_v54  ;;  %v1033_v52 = vadd.f32 0.5, %v1032_v51  ;;  %v1159_v51 = vpop.permute.xlu1 %1158 }
 0x6f3   :  { %vm1160_vm1 = vcmp.eq.s32.totalorder %v1159_v51, 1 }
 0x6f4   :  { %v1036_v4 = vadd.f32 %v1035_v10, %v1034_v11 }
 0x6f6   :  { %1529 = vtanh.f32 %v1036_v4  ;;  %v2315_v44 = vsel %vm1043_vm15, %v1036_v4, %v2220_v54  ;;  %v1163_v54 = vld [vmem:[%s2393_s3 + $0x8] sm:$0xff] }
 0x6f7   :  { %v1384_v60 = vpack.c.bf16 %v1163_v54, %v1162_v59  ;;  %v1330_v59 = vld [vmem:[%s2394_s4] ss:$0 sm:$0xff] }
 0x700   :  { %v1530_v53 = vpop.eup %1529 }
 0x701   :  { %v1038_v55 = vmul.f32 %v1530_v53, %v1033_v52 }
 0x703   :  { %v2318_v56 = vsel %vm1043_vm15, %v1038_v55, %v2223_v61  ;;  %v1164_v61 = vld [vmem:[%s2393_s3 + $0x10] sm:$0xff] }
 0x704   :  { %v1046_v58 = vpack.c.bf16 %v2318_v56, %v2318_v56  ;;  %v1387_v37 = vpack.c.bf16 %v1165_v63, %v1164_v61 }
 0x706   :  { %1080 = vmatmul.mubr.bf16.vlgmr.msra.gmra.mrb[28].mxu0 %v1046_v58  ;;  %1121 = vmatmul.mubr.bf16.vlgmr.msra.gmra.mrb[28].mxu1 %v1046_v58 }
 0x707   :  { %1385 = vmatpush3.bf16.msra.mxu0 %v1384_v60  ;;  %1380 = vmatprep.mubr.msk.f32.mxu0 %vm1577_vm0, %v1578_v3 }
 0x708   :  { %1386 = vmatprep.subr.bf16.mxu0 %v1576_v62 }
 0x70b   :  { %1388 = vmatpush3.bf16.msra.mxu0 %v1387_v37 }
 0x70c   :  { %1389 = vmatprep.subr.bf16.mxu0 %v1576_v62 }
 0x70f   :  { %1391 = vmatpush3.bf16.msra.mxu0 %v1390_v26 }
 0x710   :  { %1392 = vmatprep.subr.bf16.mxu0 %v1576_v62 }
 0x713   :  { %1394 = vmatpush3.bf16.msra.mxu0 %v1393_v33 }
 0x714   :  { %1395 = vmatprep.subr.bf16.mxu0 %v1576_v62 }
 0x717   :  { %1397 = vmatpush3.bf16.msra.mxu0 %v1396_v57 }
 0x718   :  { %1398 = vmatprep.subr.bf16.mxu0 %v1576_v62 }
 0x71b   :  { %1400 = vmatpush3.bf16.msra.mxu0 %v1399_v46 }
 0x71c   :  { %1401 = vmatprep.subr.bf16.mxu0 %v1576_v62 }
 0x71f   :  { %1403 = vmatpush3.bf16.msra.mxu0 %v1402_v25 }
 0x720   :  { %1404 = vmatprep.subr.bf16.mxu0 %v1576_v62 }
 0x723   :  { %1406 = vmatpush3.bf16.msra.mxu0 %v1405_v2 }
 0x7d9   :  { %v1081_v7 = vpop.f32.mrb[28].mxu0  ;;  %v1122_v12 = vpop.f32.mrb[28].mxu1 }
 0x7da   :  { %v1134_v13 = vadd.f32 %v1326_v5, %v1081_v7  ;;  %v1083_v14 = vpop.f32.mrb[29].mxu0  ;;  %v1124_v15 = vpop.f32.mrb[29].mxu1  ;;  %v1136_v24 = vadd.f32 %v1328_v16, %v1122_v12 }
 0x7db   :  { %v1135_v17 = vadd.f32 %v1327_v6, %v1083_v14  ;;  %v1085_v18 = vpop.f32.mrb[30].mxu0  ;;  %v1126_v19 = vpop.f32.mrb[30].mxu1  ;;  %v1137_v28 = vadd.f32 %v1329_v27, %v1124_v15 }
 0x7dc   :  { %v1138_v20 = vmul.f32 0.5, %v1134_v13  ;;  %v1086_v21 = vpop.f32.mrb[31].mxu0  ;;  %v1127_v22 = vpop.f32.mrb[31].mxu1 }
 0x7dd   :  { %v1142_v23 = vmul.f32 0.5, %v1135_v17  ;;  %v1147_v29 = vmul.f32 0.5, %v1137_v28 }
 0x7de   :  { %1531 = vtanh.f32 %v1138_v20 }
 0x7df   :  { %1533 = vtanh.f32 %v1142_v23 }
 0x7e0   :  { %1535 = vtanh.f32 %v1136_v24 }
 0x7e1   :  { %1537 = vtanh.f32 %v1147_v29 }
 0x7e8   :  { %v1532_v32 = vpop.eup %1531 }
 0x7e9   :  { %v1534_v34 = vpop.eup %1533  ;;  %v1140_v35 = vmul.f32 0.5, %v1532_v32 }
 0x7ea   :  { %v1144_v36 = vmul.f32 0.5, %v1534_v34  ;;  %v1536_v8 = vpop.eup %1535 }
 0x7eb   :  { %v1141_v39 = vadd.f32 0.5, %v1140_v35  ;;  %v1538_v4 = vpop.eup %1537 }
 0x7ec   :  { %v1145_v9 = vadd.f32 0.5, %v1144_v36  ;;  %v1149_v40 = vmul.f32 0.5, %v1538_v4 }
 0x7ed   :  { %v1152_v10 = vmul.f32 %v1536_v8, %v1141_v39 }
 0x7ee   :  { %v1151_v0 = vmul.f32 %v1145_v9, %v2315_v44  ;;  %v1150_v52 = vadd.f32 0.5, %v1149_v40 }
 0x7f0   :  { %v1153_v11 = vadd.f32 %v1152_v10, %v1151_v0 }
 0x7f2   :  { %1539 = vtanh.f32 %v1153_v11 }
 0x7fc   :  { %v1540_v53 = vpop.eup %1539 }
 0x7fd   :  { %v1155_v55 = vmul.f32 %v1540_v53, %v1150_v52 }
 0x7ff   :  { %v1161_v58 = vsel %vm1160_vm1, %v1155_v55, %v2318_v56 }
 0x800   :  { %1381 = vmatmul.mubr.f32.vlgmr.msra.gmra.mrb[32].mxu0 %v1161_v58 }
 0x8d3   :  { %v1251_v54 = vpop.f32.mrb[32].mxu0 }
 0x8d4   :  { %v1252_v60 = vadd.f32 %v1330_v59, %v1251_v54  ;;  %v1382_v62 = vpop.f32.mrb[33].mxu0 }
 0x8d6   :  { %v1255_v44 = vmul.f32 0.5, %v1252_v60 }
 0x8d8   :  { %1541 = vtanh.f32 %v1255_v44 }
 0x8e2   :  { %v1542_v61 = vpop.eup %1541 }
 0x8e3   :  { %v1257_v63 = vmul.f32 0.5, %v1542_v61 }
 0x8e5   :  { %v1258_v37 = vadd.f32 0.5, %v1257_v63 }
 0x8e7   :  { %1259 = vst [vmem:[%s2395_s5] sm:$0xff] %v1258_v37 }

</bundles_post_ra>
